<compile_context>
chip_gen: v5e
topology: v5e:2x2
jax: 0.10.0
libtpu: 0.0.40
codegen_flags: <defaults>
</compile_context>

<pallas_src>
import math

import jax
import jax.numpy as jnp
from jax.experimental import pallas as pl
from jax.experimental.pallas import tpu as pltpu

# ----- small synthetic BERT config -----
VOCAB = 100
TYPE_VOCAB = 2
MAX_POS = 64
HIDDEN = 32
N_LAYERS = 2
N_HEADS = 2
HEAD_DIM = HIDDEN // N_HEADS
INTERMEDIATE = 64
NUM_SYMPS = 4
LN_EPS = 1e-12


# ---------------- fused Pallas kernel ----------------

def _bert_forward_kernel(emb_ref, bias_ref, embg_ref, embb_ref,
                         wq_ref, bq_ref, wk_ref, bk_ref, wv_ref, bv_ref,
                         wo_ref, bo_ref, ln1g_ref, ln1b_ref,
                         w1_ref, b1_ref, w2_ref, b2_ref, ln2g_ref, ln2b_ref,
                         clfw_ref, clfb_ref, out_ref):
    """One program = one batch element. Everything stays in vregs/VMEM."""

    def layernorm(h, g, b):
        mu = jnp.mean(h, axis=-1, keepdims=True)
        var = jnp.mean(jnp.square(h - mu), axis=-1, keepdims=True)
        return (h - mu) * jax.lax.rsqrt(var + jnp.float32(LN_EPS)) * g + b

    def gelu(y):
        c = jnp.float32(math.sqrt(2.0 / math.pi))
        return 0.5 * y * (1.0 + jnp.tanh(c * (y + 0.044715 * y * y * y)))

    scale = jnp.float32(1.0 / math.sqrt(HEAD_DIM))

    # ----- embeddings: LayerNorm only (sum already done in XLA glue) -----
    x = layernorm(emb_ref[0], embg_ref[...], embb_ref[...])        # [S, H]
    mask_bias = bias_ref[0]                                        # [1, S] additive mask

    # ----- encoder layers (statically unrolled) -----
    for l in range(N_LAYERS):
        # --- multi-head self-attention (heads via weight layout, no reshapes) ---
        attn = jnp.zeros_like(x)                                   # [S, H]
        for h in range(N_HEADS):
            q = jnp.dot(x, wq_ref[l, h], preferred_element_type=jnp.float32) + bq_ref[l, h]
            k = jnp.dot(x, wk_ref[l, h], preferred_element_type=jnp.float32) + bk_ref[l, h]
            v = jnp.dot(x, wv_ref[l, h], preferred_element_type=jnp.float32) + bv_ref[l, h]
            # scores = q @ k^T  (contract on head_dim, no explicit transpose)
            s = jax.lax.dot_general(q, k, (((1,), (1,)), ((), ())),
                                    preferred_element_type=jnp.float32) * scale
            s = s + mask_bias                                      # broadcast over queries
            m = jnp.max(s, axis=-1, keepdims=True)
            p = jnp.exp(s - m)
            denom = jnp.sum(p, axis=-1, keepdims=True)
            p = p * pl.reciprocal(denom, approx=True)              # EUP reciprocal
            ctx = jnp.dot(p, v, preferred_element_type=jnp.float32)          # [S, D]
            # output projection: accumulate per-head contribution (avoids concat)
            attn = attn + jnp.dot(ctx, wo_ref[l, h], preferred_element_type=jnp.float32)
        attn = attn + bo_ref[l]
        x = layernorm(attn + x, ln1g_ref[l], ln1b_ref[l])

        # --- feed-forward ---
        ff = gelu(jnp.dot(x, w1_ref[l], preferred_element_type=jnp.float32) + b1_ref[l])
        ff = jnp.dot(ff, w2_ref[l], preferred_element_type=jnp.float32) + b2_ref[l]
        x = layernorm(ff + x, ln2g_ref[l], ln2b_ref[l])

    # ----- [CLS] token -> (dropout = identity) -> classifier -----
    cls = x[0:1, :]                                                # [1, H]
    logits = jnp.dot(cls, clfw_ref[...], preferred_element_type=jnp.float32) + clfb_ref[...]
    out_ref[0] = logits                                            # [1, NUM_SYMPS]


def _const_spec(shape):
    zeros = (0,) * len(shape)
    return pl.BlockSpec(shape, lambda b, _z=zeros: _z)


def forward(packed, input_ids, attention_mask, token_type_ids):
    B, S = input_ids.shape

    # Embedding gathers + sum stay in XLA (tiny tables).
    emb = (jnp.take(packed["word_emb"], input_ids, axis=0)
           + packed["pos_emb"][None, :S, :]
           + jnp.take(packed["type_emb"], token_type_ids, axis=0)).astype(jnp.float32)

    # Additive attention bias [B, 1, S] (no per-head repeat).
    bias = ((1.0 - attention_mask.astype(jnp.float32)) * jnp.float32(-1e9)).reshape(B, 1, S)

    out = pl.pallas_call(
        _bert_forward_kernel,
        grid=(B,),
        out_shape=jax.ShapeDtypeStruct((B, 1, NUM_SYMPS), jnp.float32),
        in_specs=[
            pl.BlockSpec((1, S, HIDDEN), lambda b: (b, 0, 0)),     # emb
            pl.BlockSpec((1, 1, S), lambda b: (b, 0, 0)),          # mask bias
            _const_spec((1, HIDDEN)),                              # emb_ln_g
            _const_spec((1, HIDDEN)),                              # emb_ln_b
            _const_spec((N_LAYERS, N_HEADS, HIDDEN, HEAD_DIM)),    # wq
            _const_spec((N_LAYERS, N_HEADS, 1, HEAD_DIM)),         # bq
            _const_spec((N_LAYERS, N_HEADS, HIDDEN, HEAD_DIM)),    # wk
            _const_spec((N_LAYERS, N_HEADS, 1, HEAD_DIM)),         # bk
            _const_spec((N_LAYERS, N_HEADS, HIDDEN, HEAD_DIM)),    # wv
            _const_spec((N_LAYERS, N_HEADS, 1, HEAD_DIM)),         # bv
            _const_spec((N_LAYERS, N_HEADS, HEAD_DIM, HIDDEN)),    # wo (per-head)
            _const_spec((N_LAYERS, 1, HIDDEN)),                    # bo
            _const_spec((N_LAYERS, 1, HIDDEN)),                    # ln1_g
            _const_spec((N_LAYERS, 1, HIDDEN)),                    # ln1_b
            _const_spec((N_LAYERS, HIDDEN, INTERMEDIATE)),         # w1
            _const_spec((N_LAYERS, 1, INTERMEDIATE)),              # b1
            _const_spec((N_LAYERS, INTERMEDIATE, HIDDEN)),         # w2
            _const_spec((N_LAYERS, 1, HIDDEN)),                    # b2
            _const_spec((N_LAYERS, 1, HIDDEN)),                    # ln2_g
            _const_spec((N_LAYERS, 1, HIDDEN)),                    # ln2_b
            _const_spec((HIDDEN, NUM_SYMPS)),                      # clf_w
            _const_spec((1, NUM_SYMPS)),                           # clf_b
        ],
        out_specs=pl.BlockSpec((1, 1, NUM_SYMPS), lambda b: (b, 0, 0)),
        compiler_params=pltpu.CompilerParams(dimension_semantics=("parallel",)),
    )(emb, bias,
      packed["emb_ln_g"], packed["emb_ln_b"],
      packed["wq"], packed["bq"], packed["wk"], packed["bk"], packed["wv"], packed["bv"],
      packed["wo"], packed["bo"], packed["ln1_g"], packed["ln1_b"],
      packed["w1"], packed["b1"], packed["w2"], packed["b2"],
      packed["ln2_g"], packed["ln2_b"],
      packed["clf_w"], packed["clf_b"])
    return out[:, 0, :]


# ---------------- parameter construction ----------------

def init_params(key):
    """Standard (PyTorch-like) parameter shapes: weights stored [in, out]."""
    keys = iter(jax.random.split(key, 128))

    def w(shape):
        return jax.random.normal(next(keys), shape, jnp.float32) * 0.02

    params = {
        "word_emb": w((VOCAB, HIDDEN)),
        "pos_emb": w((MAX_POS, HIDDEN)),
        "type_emb": w((TYPE_VOCAB, HIDDEN)),
        "emb_ln_g": jnp.ones((HIDDEN,), jnp.float32),
        "emb_ln_b": jnp.zeros((HIDDEN,), jnp.float32),
        "layers": [],
        "clf_w": w((HIDDEN, NUM_SYMPS)),
        "clf_b": jnp.zeros((NUM_SYMPS,), jnp.float32),
    }
    for _ in range(N_LAYERS):
        params["layers"].append({
            "wq": w((HIDDEN, HIDDEN)), "bq": jnp.zeros((HIDDEN,), jnp.float32),
            "wk": w((HIDDEN, HIDDEN)), "bk": jnp.zeros((HIDDEN,), jnp.float32),
            "wv": w((HIDDEN, HIDDEN)), "bv": jnp.zeros((HIDDEN,), jnp.float32),
            "wo": w((HIDDEN, HIDDEN)), "bo": jnp.zeros((HIDDEN,), jnp.float32),
            "ln1_g": jnp.ones((HIDDEN,), jnp.float32), "ln1_b": jnp.zeros((HIDDEN,), jnp.float32),
            "w1": w((HIDDEN, INTERMEDIATE)), "b1": jnp.zeros((INTERMEDIATE,), jnp.float32),
            "w2": w((INTERMEDIATE, HIDDEN)), "b2": jnp.zeros((HIDDEN,), jnp.float32),
            "ln2_g": jnp.ones((HIDDEN,), jnp.float32), "ln2_b": jnp.zeros((HIDDEN,), jnp.float32),
        })
    return params


def pack_params(p):
    """Repack standard-shape weights into the stacked / per-head layout the kernel expects."""
    L = len(p["layers"])

    def stack(name):
        return jnp.stack([lp[name] for lp in p["layers"]])

    def per_head_w(name):            # [L, H_in, H_out] -> [L, NH, H_in, D]
        w = stack(name)
        return w.reshape(L, HIDDEN, N_HEADS, HEAD_DIM).transpose(0, 2, 1, 3)

    def per_head_b(name):            # [L, H] -> [L, NH, 1, D]
        return stack(name).reshape(L, N_HEADS, 1, HEAD_DIM)

    def row(name):                   # [L, H] -> [L, 1, H]
        return stack(name)[:, None, :]

    return {
        "word_emb": p["word_emb"], "pos_emb": p["pos_emb"], "type_emb": p["type_emb"],
        "emb_ln_g": p["emb_ln_g"].reshape(1, HIDDEN),
        "emb_ln_b": p["emb_ln_b"].reshape(1, HIDDEN),
        "wq": per_head_w("wq"), "bq": per_head_b("bq"),
        "wk": per_head_w("wk"), "bk": per_head_b("bk"),
        "wv": per_head_w("wv"), "bv": per_head_b("bv"),
        # wo input dim H = NH*D (head-major) -> [L, NH, D, H]
        "wo": stack("wo").reshape(L, N_HEADS, HEAD_DIM, HIDDEN),
        "bo": row("bo"),
        "ln1_g": row("ln1_g"), "ln1_b": row("ln1_b"),
        "w1": stack("w1"), "b1": stack("b1")[:, None, :],
        "w2": stack("w2"), "b2": stack("b2")[:, None, :],
        "ln2_g": row("ln2_g"), "ln2_b": row("ln2_b"),
        "clf_w": p["clf_w"], "clf_b": p["clf_b"].reshape(1, NUM_SYMPS),
    }


# ---------------- pure-JAX reference (same math, standard layouts) ----------------

def reference_forward(params, input_ids, attention_mask, token_type_ids):
    B, S = input_ids.shape

    def ln(h, g, b):
        mu = jnp.mean(h, -1, keepdims=True)
        var = jnp.mean(jnp.square(h - mu), -1, keepdims=True)
        return (h - mu) * jax.lax.rsqrt(var + LN_EPS) * g + b

    def gelu(y):
        c = math.sqrt(2.0 / math.pi)
        return 0.5 * y * (1.0 + jnp.tanh(c * (y + 0.044715 * y ** 3)))

    emb = (jnp.take(params["word_emb"], input_ids, axis=0)
           + params["pos_emb"][None, :S, :]
           + jnp.take(params["type_emb"], token_type_ids, axis=0))
    x = ln(emb, params["emb_ln_g"], params["emb_ln_b"])
    bias = (1.0 - attention_mask.astype(jnp.float32))[:, None, None, :] * -1e9

    for p in params["layers"]:
        q = x @ p["wq"] + p["bq"]
        k = x @ p["wk"] + p["bk"]
        v = x @ p["wv"] + p["bv"]

        def split(t):
            return t.reshape(B, S, N_HEADS, HEAD_DIM).transpose(0, 2, 1, 3)

        s = jnp.einsum("bhqd,bhkd->bhqk", split(q), split(k)) / math.sqrt(HEAD_DIM) + bias
        a = jax.nn.softmax(s, axis=-1)
        ctx = jnp.einsum("bhqk,bhkd->bhqd", a, split(v)).transpose(0, 2, 1, 3).reshape(B, S, HIDDEN)
        h1 = ln(ctx @ p["wo"] + p["bo"] + x, p["ln1_g"], p["ln1_b"])
        ff = gelu(h1 @ p["w1"] + p["b1"]) @ p["w2"] + p["b2"]
        x = ln(ff + h1, p["ln2_g"], p["ln2_b"])

    cls = x[:, 0, :]
    return cls @ params["clf_w"] + params["clf_b"]


if __name__ == "__main__":
    key = jax.random.PRNGKey(0)
    pkey, ikey = jax.random.split(key)

    params = init_params(pkey)
    packed = pack_params(params)

    B, S = 2, 8
    input_ids = jax.random.randint(ikey, (B, S), 0, VOCAB, dtype=jnp.int32)
    attention_mask = jnp.ones((B, S), jnp.int32).at[1, 6:].set(0)   # second example padded
    token_type_ids = jnp.zeros((B, S), jnp.int32)

    logits = jax.jit(forward)(packed, input_ids, attention_mask, token_type_ids)
    jax.block_until_ready(logits)
    assert logits.shape == (B, NUM_SYMPS)

    ref = reference_forward(params, input_ids, attention_mask, token_type_ids)
    assert jnp.allclose(logits, ref, atol=2e-2, rtol=2e-2), (logits, ref)

    print("KERNEL_OK")
</pallas_src>

<mosaic_0001>
module attributes {stable_mosaic.version = 11 : i64} {
  func.func @_bert_forward_kernel(%arg0: i32, %arg1: memref<1x8x32xf32, #tpu.memory_space<vmem>>, %arg2: memref<1x1x8xf32, #tpu.memory_space<vmem>>, %arg3: memref<1x32xf32, #tpu.memory_space<vmem>>, %arg4: memref<1x32xf32, #tpu.memory_space<vmem>>, %arg5: memref<2x2x32x16xf32, #tpu.memory_space<vmem>>, %arg6: memref<2x2x1x16xf32, #tpu.memory_space<vmem>>, %arg7: memref<2x2x32x16xf32, #tpu.memory_space<vmem>>, %arg8: memref<2x2x1x16xf32, #tpu.memory_space<vmem>>, %arg9: memref<2x2x32x16xf32, #tpu.memory_space<vmem>>, %arg10: memref<2x2x1x16xf32, #tpu.memory_space<vmem>>, %arg11: memref<2x2x16x32xf32, #tpu.memory_space<vmem>>, %arg12: memref<2x1x32xf32, #tpu.memory_space<vmem>>, %arg13: memref<2x1x32xf32, #tpu.memory_space<vmem>>, %arg14: memref<2x1x32xf32, #tpu.memory_space<vmem>>, %arg15: memref<2x32x64xf32, #tpu.memory_space<vmem>>, %arg16: memref<2x1x64xf32, #tpu.memory_space<vmem>>, %arg17: memref<2x64x32xf32, #tpu.memory_space<vmem>>, %arg18: memref<2x1x32xf32, #tpu.memory_space<vmem>>, %arg19: memref<2x1x32xf32, #tpu.memory_space<vmem>>, %arg20: memref<2x1x32xf32, #tpu.memory_space<vmem>>, %arg21: memref<32x4xf32, #tpu.memory_space<vmem>>, %arg22: memref<1x4xf32, #tpu.memory_space<vmem>>, %arg23: memref<1x1x4xf32, #tpu.memory_space<vmem>>) attributes {dimension_semantics = [#tpu.dimension_semantics<parallel>], iteration_bounds = array<i64: 2>, scalar_prefetch = 0 : i64, scratch_operands = 0 : i64, tpu.core_type = #tpu.core_type<tc>, window_params = [{transform_indices = @transform_0, window_bounds = array<i64: 1, 8, 32>}, {transform_indices = @transform_1, window_bounds = array<i64: 1, 1, 8>}, {pipeline_mode = #tpu.pipeline_mode<synchronous>, transform_indices = @transform_2, window_bounds = array<i64: 1, 32>}, {pipeline_mode = #tpu.pipeline_mode<synchronous>, transform_indices = @transform_3, window_bounds = array<i64: 1, 32>}, {pipeline_mode = #tpu.pipeline_mode<synchronous>, transform_indices = @transform_4, window_bounds = array<i64: 2, 2, 32, 16>}, {pipeline_mode = #tpu.pipeline_mode<synchronous>, transform_indices = @transform_5, window_bounds = array<i64: 2, 2, 1, 16>}, {pipeline_mode = #tpu.pipeline_mode<synchronous>, transform_indices = @transform_6, window_bounds = array<i64: 2, 2, 32, 16>}, {pipeline_mode = #tpu.pipeline_mode<synchronous>, transform_indices = @transform_7, window_bounds = array<i64: 2, 2, 1, 16>}, {pipeline_mode = #tpu.pipeline_mode<synchronous>, transform_indices = @transform_8, window_bounds = array<i64: 2, 2, 32, 16>}, {pipeline_mode = #tpu.pipeline_mode<synchronous>, transform_indices = @transform_9, window_bounds = array<i64: 2, 2, 1, 16>}, {pipeline_mode = #tpu.pipeline_mode<synchronous>, transform_indices = @transform_10, window_bounds = array<i64: 2, 2, 16, 32>}, {pipeline_mode = #tpu.pipeline_mode<synchronous>, transform_indices = @transform_11, window_bounds = array<i64: 2, 1, 32>}, {pipeline_mode = #tpu.pipeline_mode<synchronous>, transform_indices = @transform_12, window_bounds = array<i64: 2, 1, 32>}, {pipeline_mode = #tpu.pipeline_mode<synchronous>, transform_indices = @transform_13, window_bounds = array<i64: 2, 1, 32>}, {pipeline_mode = #tpu.pipeline_mode<synchronous>, transform_indices = @transform_14, window_bounds = array<i64: 2, 32, 64>}, {pipeline_mode = #tpu.pipeline_mode<synchronous>, transform_indices = @transform_15, window_bounds = array<i64: 2, 1, 64>}, {pipeline_mode = #tpu.pipeline_mode<synchronous>, transform_indices = @transform_16, window_bounds = array<i64: 2, 64, 32>}, {pipeline_mode = #tpu.pipeline_mode<synchronous>, transform_indices = @transform_17, window_bounds = array<i64: 2, 1, 32>}, {pipeline_mode = #tpu.pipeline_mode<synchronous>, transform_indices = @transform_18, window_bounds = array<i64: 2, 1, 32>}, {pipeline_mode = #tpu.pipeline_mode<synchronous>, transform_indices = @transform_19, window_bounds = array<i64: 2, 1, 32>}, {pipeline_mode = #tpu.pipeline_mode<synchronous>, transform_indices = @transform_20, window_bounds = array<i64: 32, 4>}, {pipeline_mode = #tpu.pipeline_mode<synchronous>, transform_indices = @transform_21, window_bounds = array<i64: 1, 4>}, {transform_indices = @transform_22, window_bounds = array<i64: 1, 1, 4>}]} {
    %c0 = arith.constant 0 : index
    %c0_0 = arith.constant 0 : index
    %c0_1 = arith.constant 0 : index
    %0 = vector.load %arg1[%c0, %c0_0, %c0_1] : memref<1x8x32xf32, #tpu.memory_space<vmem>>, vector<1x8x32xf32>
    %1 = vector.shape_cast %0 : vector<1x8x32xf32> to vector<8x32xf32>
    %c0_2 = arith.constant 0 : index
    %c0_3 = arith.constant 0 : index
    %2 = vector.load %arg3[%c0_2, %c0_3] : memref<1x32xf32, #tpu.memory_space<vmem>>, vector<1x32xf32>
    %c0_4 = arith.constant 0 : index
    %c0_5 = arith.constant 0 : index
    %3 = vector.load %arg4[%c0_4, %c0_5] : memref<1x32xf32, #tpu.memory_space<vmem>>, vector<1x32xf32>
    %cst = arith.constant dense<0.000000e+00> : vector<8xf32>
    %4 = vector.multi_reduction <add>, %1, %cst [1] : vector<8x32xf32> to vector<8xf32>
    %5 = vector.shape_cast %4 : vector<8xf32> to vector<8x1xf32>
    %cst_6 = arith.constant 3.200000e+01 : f32
    %6 = vector.broadcast %cst_6 : f32 to vector<8x1xf32>
    %7 = arith.divf %5, %6 : vector<8x1xf32>
    %8 = vector.broadcast %7 : vector<8x1xf32> to vector<8x32xf32>
    %9 = arith.subf %1, %8 : vector<8x32xf32>
    %10 = arith.mulf %9, %9 : vector<8x32xf32>
    %cst_7 = arith.constant dense<0.000000e+00> : vector<8xf32>
    %11 = vector.multi_reduction <add>, %10, %cst_7 [1] : vector<8x32xf32> to vector<8xf32>
    %12 = vector.shape_cast %11 : vector<8xf32> to vector<8x1xf32>
    %cst_8 = arith.constant 3.200000e+01 : f32
    %13 = vector.broadcast %cst_8 : f32 to vector<8x1xf32>
    %14 = arith.divf %12, %13 : vector<8x1xf32>
    %15 = vector.broadcast %7 : vector<8x1xf32> to vector<8x32xf32>
    %16 = arith.subf %1, %15 : vector<8x32xf32>
    %cst_9 = arith.constant 9.99999996E-13 : f32
    %17 = vector.broadcast %cst_9 : f32 to vector<8x1xf32>
    %18 = arith.addf %14, %17 : vector<8x1xf32>
    %19 = math.rsqrt %18 : vector<8x1xf32>
    %20 = vector.broadcast %19 : vector<8x1xf32> to vector<8x32xf32>
    %21 = arith.mulf %16, %20 : vector<8x32xf32>
    %22 = vector.broadcast %2 : vector<1x32xf32> to vector<8x32xf32>
    %23 = arith.mulf %21, %22 : vector<8x32xf32>
    %24 = vector.broadcast %3 : vector<1x32xf32> to vector<8x32xf32>
    %25 = arith.addf %23, %24 : vector<8x32xf32>
    %c0_10 = arith.constant 0 : index
    %c0_11 = arith.constant 0 : index
    %c0_12 = arith.constant 0 : index
    %26 = vector.load %arg2[%c0_10, %c0_11, %c0_12] : memref<1x1x8xf32, #tpu.memory_space<vmem>>, vector<1x1x8xf32>
    %27 = vector.shape_cast %26 : vector<1x1x8xf32> to vector<1x8xf32>
    %cst_13 = arith.constant 0.000000e+00 : f32
    %28 = vector.broadcast %cst_13 : f32 to vector<8x32xf32>
    %c0_14 = arith.constant 0 : index
    %c0_15 = arith.constant 0 : index
    %c0_16 = arith.constant 0 : index
    %c0_17 = arith.constant 0 : index
    %29 = vector.load %arg5[%c0_14, %c0_15, %c0_16, %c0_17] : memref<2x2x32x16xf32, #tpu.memory_space<vmem>>, vector<1x1x32x16xf32>
    %30 = vector.shape_cast %29 : vector<1x1x32x16xf32> to vector<32x16xf32>
    %cst_18 = arith.constant dense<0.000000e+00> : vector<8x16xf32>
    %31 = tpu.matmul %25, %30, %cst_18 {dimension_numbers = #tpu.dot_dimension_numbers<[1], [0], [0], [1], [0, 0, 1, 1], [], []>} : vector<8x32xf32>, vector<32x16xf32>, vector<8x16xf32> -> vector<8x16xf32>
    %c0_19 = arith.constant 0 : index
    %c0_20 = arith.constant 0 : index
    %c0_21 = arith.constant 0 : index
    %c0_22 = arith.constant 0 : index
    %32 = vector.load %arg6[%c0_19, %c0_20, %c0_21, %c0_22] : memref<2x2x1x16xf32, #tpu.memory_space<vmem>>, vector<1x1x1x16xf32>
    %33 = vector.shape_cast %32 : vector<1x1x1x16xf32> to vector<1x16xf32>
    %34 = vector.broadcast %33 : vector<1x16xf32> to vector<8x16xf32>
    %35 = arith.addf %31, %34 : vector<8x16xf32>
    %c0_23 = arith.constant 0 : index
    %c0_24 = arith.constant 0 : index
    %c0_25 = arith.constant 0 : index
    %c0_26 = arith.constant 0 : index
    %36 = vector.load %arg7[%c0_23, %c0_24, %c0_25, %c0_26] : memref<2x2x32x16xf32, #tpu.memory_space<vmem>>, vector<1x1x32x16xf32>
    %37 = vector.shape_cast %36 : vector<1x1x32x16xf32> to vector<32x16xf32>
    %cst_27 = arith.constant dense<0.000000e+00> : vector<8x16xf32>
    %38 = tpu.matmul %25, %37, %cst_27 {dimension_numbers = #tpu.dot_dimension_numbers<[1], [0], [0], [1], [0, 0, 1, 1], [], []>} : vector<8x32xf32>, vector<32x16xf32>, vector<8x16xf32> -> vector<8x16xf32>
    %c0_28 = arith.constant 0 : index
    %c0_29 = arith.constant 0 : index
    %c0_30 = arith.constant 0 : index
    %c0_31 = arith.constant 0 : index
    %39 = vector.load %arg8[%c0_28, %c0_29, %c0_30, %c0_31] : memref<2x2x1x16xf32, #tpu.memory_space<vmem>>, vector<1x1x1x16xf32>
    %40 = vector.shape_cast %39 : vector<1x1x1x16xf32> to vector<1x16xf32>
    %41 = vector.broadcast %40 : vector<1x16xf32> to vector<8x16xf32>
    %42 = arith.addf %38, %41 : vector<8x16xf32>
    %c0_32 = arith.constant 0 : index
    %c0_33 = arith.constant 0 : index
    %c0_34 = arith.constant 0 : index
    %c0_35 = arith.constant 0 : index
    %43 = vector.load %arg9[%c0_32, %c0_33, %c0_34, %c0_35] : memref<2x2x32x16xf32, #tpu.memory_space<vmem>>, vector<1x1x32x16xf32>
    %44 = vector.shape_cast %43 : vector<1x1x32x16xf32> to vector<32x16xf32>
    %cst_36 = arith.constant dense<0.000000e+00> : vector<8x16xf32>
    %45 = tpu.matmul %25, %44, %cst_36 {dimension_numbers = #tpu.dot_dimension_numbers<[1], [0], [0], [1], [0, 0, 1, 1], [], []>} : vector<8x32xf32>, vector<32x16xf32>, vector<8x16xf32> -> vector<8x16xf32>
    %c0_37 = arith.constant 0 : index
    %c0_38 = arith.constant 0 : index
    %c0_39 = arith.constant 0 : index
    %c0_40 = arith.constant 0 : index
    %46 = vector.load %arg10[%c0_37, %c0_38, %c0_39, %c0_40] : memref<2x2x1x16xf32, #tpu.memory_space<vmem>>, vector<1x1x1x16xf32>
    %47 = vector.shape_cast %46 : vector<1x1x1x16xf32> to vector<1x16xf32>
    %48 = vector.broadcast %47 : vector<1x16xf32> to vector<8x16xf32>
    %49 = arith.addf %45, %48 : vector<8x16xf32>
    %cst_41 = arith.constant dense<0.000000e+00> : vector<8x8xf32>
    %50 = tpu.matmul %35, %42, %cst_41 {dimension_numbers = #tpu.dot_dimension_numbers<[1], [1], [0], [0], [0, 0, 1, 0], [], []>} : vector<8x16xf32>, vector<8x16xf32>, vector<8x8xf32> -> vector<8x8xf32>
    %cst_42 = arith.constant 2.500000e-01 : f32
    %51 = vector.broadcast %cst_42 : f32 to vector<8x8xf32>
    %52 = arith.mulf %50, %51 : vector<8x8xf32>
    %53 = vector.broadcast %27 : vector<1x8xf32> to vector<8x8xf32>
    %54 = arith.addf %52, %53 : vector<8x8xf32>
    %cst_43 = arith.constant dense<0xFF800000> : vector<8xf32>
    %55 = vector.multi_reduction <maximumf>, %54, %cst_43 [1] : vector<8x8xf32> to vector<8xf32>
    %56 = vector.shape_cast %55 : vector<8xf32> to vector<8x1xf32>
    %57 = vector.broadcast %56 : vector<8x1xf32> to vector<8x8xf32>
    %58 = arith.subf %54, %57 : vector<8x8xf32>
    %59 = math.exp %58 : vector<8x8xf32>
    %cst_44 = arith.constant dense<0.000000e+00> : vector<8xf32>
    %60 = vector.multi_reduction <add>, %59, %cst_44 [1] : vector<8x8xf32> to vector<8xf32>
    %61 = vector.shape_cast %60 : vector<8xf32> to vector<8x1xf32>
    %62 = tpu.reciprocal %61 {approx = true} : vector<8x1xf32> -> vector<8x1xf32>
    %63 = vector.broadcast %62 : vector<8x1xf32> to vector<8x8xf32>
    %64 = arith.mulf %59, %63 : vector<8x8xf32>
    %cst_45 = arith.constant dense<0.000000e+00> : vector<8x16xf32>
    %65 = tpu.matmul %64, %49, %cst_45 {dimension_numbers = #tpu.dot_dimension_numbers<[1], [0], [0], [1], [0, 0, 1, 1], [], []>} : vector<8x8xf32>, vector<8x16xf32>, vector<8x16xf32> -> vector<8x16xf32>
    %c0_46 = arith.constant 0 : index
    %c0_47 = arith.constant 0 : index
    %c0_48 = arith.constant 0 : index
    %c0_49 = arith.constant 0 : index
    %66 = vector.load %arg11[%c0_46, %c0_47, %c0_48, %c0_49] : memref<2x2x16x32xf32, #tpu.memory_space<vmem>>, vector<1x1x16x32xf32>
    %67 = vector.shape_cast %66 : vector<1x1x16x32xf32> to vector<16x32xf32>
    %cst_50 = arith.constant dense<0.000000e+00> : vector<8x32xf32>
    %68 = tpu.matmul %65, %67, %cst_50 {dimension_numbers = #tpu.dot_dimension_numbers<[1], [0], [0], [1], [0, 0, 1, 1], [], []>} : vector<8x16xf32>, vector<16x32xf32>, vector<8x32xf32> -> vector<8x32xf32>
    %69 = arith.addf %28, %68 : vector<8x32xf32>
    %c0_51 = arith.constant 0 : index
    %c1 = arith.constant 1 : index
    %c0_52 = arith.constant 0 : index
    %c0_53 = arith.constant 0 : index
    %70 = vector.load %arg5[%c0_51, %c1, %c0_52, %c0_53] : memref<2x2x32x16xf32, #tpu.memory_space<vmem>>, vector<1x1x32x16xf32>
    %71 = vector.shape_cast %70 : vector<1x1x32x16xf32> to vector<32x16xf32>
    %cst_54 = arith.constant dense<0.000000e+00> : vector<8x16xf32>
    %72 = tpu.matmul %25, %71, %cst_54 {dimension_numbers = #tpu.dot_dimension_numbers<[1], [0], [0], [1], [0, 0, 1, 1], [], []>} : vector<8x32xf32>, vector<32x16xf32>, vector<8x16xf32> -> vector<8x16xf32>
    %c0_55 = arith.constant 0 : index
    %c1_56 = arith.constant 1 : index
    %c0_57 = arith.constant 0 : index
    %c0_58 = arith.constant 0 : index
    %73 = vector.load %arg6[%c0_55, %c1_56, %c0_57, %c0_58] : memref<2x2x1x16xf32, #tpu.memory_space<vmem>>, vector<1x1x1x16xf32>
    %74 = vector.shape_cast %73 : vector<1x1x1x16xf32> to vector<1x16xf32>
    %75 = vector.broadcast %74 : vector<1x16xf32> to vector<8x16xf32>
    %76 = arith.addf %72, %75 : vector<8x16xf32>
    %c0_59 = arith.constant 0 : index
    %c1_60 = arith.constant 1 : index
    %c0_61 = arith.constant 0 : index
    %c0_62 = arith.constant 0 : index
    %77 = vector.load %arg7[%c0_59, %c1_60, %c0_61, %c0_62] : memref<2x2x32x16xf32, #tpu.memory_space<vmem>>, vector<1x1x32x16xf32>
    %78 = vector.shape_cast %77 : vector<1x1x32x16xf32> to vector<32x16xf32>
    %cst_63 = arith.constant dense<0.000000e+00> : vector<8x16xf32>
    %79 = tpu.matmul %25, %78, %cst_63 {dimension_numbers = #tpu.dot_dimension_numbers<[1], [0], [0], [1], [0, 0, 1, 1], [], []>} : vector<8x32xf32>, vector<32x16xf32>, vector<8x16xf32> -> vector<8x16xf32>
    %c0_64 = arith.constant 0 : index
    %c1_65 = arith.constant 1 : index
    %c0_66 = arith.constant 0 : index
    %c0_67 = arith.constant 0 : index
    %80 = vector.load %arg8[%c0_64, %c1_65, %c0_66, %c0_67] : memref<2x2x1x16xf32, #tpu.memory_space<vmem>>, vector<1x1x1x16xf32>
    %81 = vector.shape_cast %80 : vector<1x1x1x16xf32> to vector<1x16xf32>
    %82 = vector.broadcast %81 : vector<1x16xf32> to vector<8x16xf32>
    %83 = arith.addf %79, %82 : vector<8x16xf32>
    %c0_68 = arith.constant 0 : index
    %c1_69 = arith.constant 1 : index
    %c0_70 = arith.constant 0 : index
    %c0_71 = arith.constant 0 : index
    %84 = vector.load %arg9[%c0_68, %c1_69, %c0_70, %c0_71] : memref<2x2x32x16xf32, #tpu.memory_space<vmem>>, vector<1x1x32x16xf32>
    %85 = vector.shape_cast %84 : vector<1x1x32x16xf32> to vector<32x16xf32>
    %cst_72 = arith.constant dense<0.000000e+00> : vector<8x16xf32>
    %86 = tpu.matmul %25, %85, %cst_72 {dimension_numbers = #tpu.dot_dimension_numbers<[1], [0], [0], [1], [0, 0, 1, 1], [], []>} : vector<8x32xf32>, vector<32x16xf32>, vector<8x16xf32> -> vector<8x16xf32>
    %c0_73 = arith.constant 0 : index
    %c1_74 = arith.constant 1 : index
    %c0_75 = arith.constant 0 : index
    %c0_76 = arith.constant 0 : index
    %87 = vector.load %arg10[%c0_73, %c1_74, %c0_75, %c0_76] : memref<2x2x1x16xf32, #tpu.memory_space<vmem>>, vector<1x1x1x16xf32>
    %88 = vector.shape_cast %87 : vector<1x1x1x16xf32> to vector<1x16xf32>
    %89 = vector.broadcast %88 : vector<1x16xf32> to vector<8x16xf32>
    %90 = arith.addf %86, %89 : vector<8x16xf32>
    %cst_77 = arith.constant dense<0.000000e+00> : vector<8x8xf32>
    %91 = tpu.matmul %76, %83, %cst_77 {dimension_numbers = #tpu.dot_dimension_numbers<[1], [1], [0], [0], [0, 0, 1, 0], [], []>} : vector<8x16xf32>, vector<8x16xf32>, vector<8x8xf32> -> vector<8x8xf32>
    %cst_78 = arith.constant 2.500000e-01 : f32
    %92 = vector.broadcast %cst_78 : f32 to vector<8x8xf32>
    %93 = arith.mulf %91, %92 : vector<8x8xf32>
    %94 = vector.broadcast %27 : vector<1x8xf32> to vector<8x8xf32>
    %95 = arith.addf %93, %94 : vector<8x8xf32>
    %cst_79 = arith.constant dense<0xFF800000> : vector<8xf32>
    %96 = vector.multi_reduction <maximumf>, %95, %cst_79 [1] : vector<8x8xf32> to vector<8xf32>
    %97 = vector.shape_cast %96 : vector<8xf32> to vector<8x1xf32>
    %98 = vector.broadcast %97 : vector<8x1xf32> to vector<8x8xf32>
    %99 = arith.subf %95, %98 : vector<8x8xf32>
    %100 = math.exp %99 : vector<8x8xf32>
    %cst_80 = arith.constant dense<0.000000e+00> : vector<8xf32>
    %101 = vector.multi_reduction <add>, %100, %cst_80 [1] : vector<8x8xf32> to vector<8xf32>
    %102 = vector.shape_cast %101 : vector<8xf32> to vector<8x1xf32>
    %103 = tpu.reciprocal %102 {approx = true} : vector<8x1xf32> -> vector<8x1xf32>
    %104 = vector.broadcast %103 : vector<8x1xf32> to vector<8x8xf32>
    %105 = arith.mulf %100, %104 : vector<8x8xf32>
    %cst_81 = arith.constant dense<0.000000e+00> : vector<8x16xf32>
    %106 = tpu.matmul %105, %90, %cst_81 {dimension_numbers = #tpu.dot_dimension_numbers<[1], [0], [0], [1], [0, 0, 1, 1], [], []>} : vector<8x8xf32>, vector<8x16xf32>, vector<8x16xf32> -> vector<8x16xf32>
    %c0_82 = arith.constant 0 : index
    %c1_83 = arith.constant 1 : index
    %c0_84 = arith.constant 0 : index
    %c0_85 = arith.constant 0 : index
    %107 = vector.load %arg11[%c0_82, %c1_83, %c0_84, %c0_85] : memref<2x2x16x32xf32, #tpu.memory_space<vmem>>, vector<1x1x16x32xf32>
    %108 = vector.shape_cast %107 : vector<1x1x16x32xf32> to vector<16x32xf32>
    %cst_86 = arith.constant dense<0.000000e+00> : vector<8x32xf32>
    %109 = tpu.matmul %106, %108, %cst_86 {dimension_numbers = #tpu.dot_dimension_numbers<[1], [0], [0], [1], [0, 0, 1, 1], [], []>} : vector<8x16xf32>, vector<16x32xf32>, vector<8x32xf32> -> vector<8x32xf32>
    %110 = arith.addf %69, %109 : vector<8x32xf32>
    %c0_87 = arith.constant 0 : index
    %c0_88 = arith.constant 0 : index
    %c0_89 = arith.constant 0 : index
    %111 = vector.load %arg12[%c0_87, %c0_88, %c0_89] : memref<2x1x32xf32, #tpu.memory_space<vmem>>, vector<1x1x32xf32>
    %112 = vector.shape_cast %111 : vector<1x1x32xf32> to vector<1x32xf32>
    %113 = vector.broadcast %112 : vector<1x32xf32> to vector<8x32xf32>
    %114 = arith.addf %110, %113 : vector<8x32xf32>
    %115 = arith.addf %114, %25 : vector<8x32xf32>
    %c0_90 = arith.constant 0 : index
    %c0_91 = arith.constant 0 : index
    %c0_92 = arith.constant 0 : index
    %116 = vector.load %arg13[%c0_90, %c0_91, %c0_92] : memref<2x1x32xf32, #tpu.memory_space<vmem>>, vector<1x1x32xf32>
    %117 = vector.shape_cast %116 : vector<1x1x32xf32> to vector<1x32xf32>
    %c0_93 = arith.constant 0 : index
    %c0_94 = arith.constant 0 : index
    %c0_95 = arith.constant 0 : index
    %118 = vector.load %arg14[%c0_93, %c0_94, %c0_95] : memref<2x1x32xf32, #tpu.memory_space<vmem>>, vector<1x1x32xf32>
    %119 = vector.shape_cast %118 : vector<1x1x32xf32> to vector<1x32xf32>
    %cst_96 = arith.constant dense<0.000000e+00> : vector<8xf32>
    %120 = vector.multi_reduction <add>, %115, %cst_96 [1] : vector<8x32xf32> to vector<8xf32>
    %121 = vector.shape_cast %120 : vector<8xf32> to vector<8x1xf32>
    %cst_97 = arith.constant 3.200000e+01 : f32
    %122 = vector.broadcast %cst_97 : f32 to vector<8x1xf32>
    %123 = arith.divf %121, %122 : vector<8x1xf32>
    %124 = vector.broadcast %123 : vector<8x1xf32> to vector<8x32xf32>
    %125 = arith.subf %115, %124 : vector<8x32xf32>
    %126 = arith.mulf %125, %125 : vector<8x32xf32>
    %cst_98 = arith.constant dense<0.000000e+00> : vector<8xf32>
    %127 = vector.multi_reduction <add>, %126, %cst_98 [1] : vector<8x32xf32> to vector<8xf32>
    %128 = vector.shape_cast %127 : vector<8xf32> to vector<8x1xf32>
    %cst_99 = arith.constant 3.200000e+01 : f32
    %129 = vector.broadcast %cst_99 : f32 to vector<8x1xf32>
    %130 = arith.divf %128, %129 : vector<8x1xf32>
    %131 = vector.broadcast %123 : vector<8x1xf32> to vector<8x32xf32>
    %132 = arith.subf %115, %131 : vector<8x32xf32>
    %cst_100 = arith.constant 9.99999996E-13 : f32
    %133 = vector.broadcast %cst_100 : f32 to vector<8x1xf32>
    %134 = arith.addf %130, %133 : vector<8x1xf32>
    %135 = math.rsqrt %134 : vector<8x1xf32>
    %136 = vector.broadcast %135 : vector<8x1xf32> to vector<8x32xf32>
    %137 = arith.mulf %132, %136 : vector<8x32xf32>
    %138 = vector.broadcast %117 : vector<1x32xf32> to vector<8x32xf32>
    %139 = arith.mulf %137, %138 : vector<8x32xf32>
    %140 = vector.broadcast %119 : vector<1x32xf32> to vector<8x32xf32>
    %141 = arith.addf %139, %140 : vector<8x32xf32>
    %c0_101 = arith.constant 0 : index
    %c0_102 = arith.constant 0 : index
    %c0_103 = arith.constant 0 : index
    %142 = vector.load %arg15[%c0_101, %c0_102, %c0_103] : memref<2x32x64xf32, #tpu.memory_space<vmem>>, vector<1x32x64xf32>
    %143 = vector.shape_cast %142 : vector<1x32x64xf32> to vector<32x64xf32>
    %cst_104 = arith.constant dense<0.000000e+00> : vector<8x64xf32>
    %144 = tpu.matmul %141, %143, %cst_104 {dimension_numbers = #tpu.dot_dimension_numbers<[1], [0], [0], [1], [0, 0, 1, 1], [], []>} : vector<8x32xf32>, vector<32x64xf32>, vector<8x64xf32> -> vector<8x64xf32>
    %c0_105 = arith.constant 0 : index
    %c0_106 = arith.constant 0 : index
    %c0_107 = arith.constant 0 : index
    %145 = vector.load %arg16[%c0_105, %c0_106, %c0_107] : memref<2x1x64xf32, #tpu.memory_space<vmem>>, vector<1x1x64xf32>
    %146 = vector.shape_cast %145 : vector<1x1x64xf32> to vector<1x64xf32>
    %147 = vector.broadcast %146 : vector<1x64xf32> to vector<8x64xf32>
    %148 = arith.addf %144, %147 : vector<8x64xf32>
    %cst_108 = arith.constant 5.000000e-01 : f32
    %149 = vector.broadcast %cst_108 : f32 to vector<8x64xf32>
    %150 = arith.mulf %149, %148 : vector<8x64xf32>
    %cst_109 = arith.constant 4.471500e-02 : f32
    %151 = vector.broadcast %cst_109 : f32 to vector<8x64xf32>
    %152 = arith.mulf %151, %148 : vector<8x64xf32>
    %153 = arith.mulf %152, %148 : vector<8x64xf32>
    %154 = arith.mulf %153, %148 : vector<8x64xf32>
    %155 = arith.addf %148, %154 : vector<8x64xf32>
    %cst_110 = arith.constant 0.797884583 : f32
    %156 = vector.broadcast %cst_110 : f32 to vector<8x64xf32>
    %157 = arith.mulf %156, %155 : vector<8x64xf32>
    %158 = math.tanh %157 : vector<8x64xf32>
    %cst_111 = arith.constant 1.000000e+00 : f32
    %159 = vector.broadcast %cst_111 : f32 to vector<8x64xf32>
    %160 = arith.addf %159, %158 : vector<8x64xf32>
    %161 = arith.mulf %150, %160 : vector<8x64xf32>
    %c0_112 = arith.constant 0 : index
    %c0_113 = arith.constant 0 : index
    %c0_114 = arith.constant 0 : index
    %162 = vector.load %arg17[%c0_112, %c0_113, %c0_114] : memref<2x64x32xf32, #tpu.memory_space<vmem>>, vector<1x64x32xf32>
    %163 = vector.shape_cast %162 : vector<1x64x32xf32> to vector<64x32xf32>
    %cst_115 = arith.constant dense<0.000000e+00> : vector<8x32xf32>
    %164 = tpu.matmul %161, %163, %cst_115 {dimension_numbers = #tpu.dot_dimension_numbers<[1], [0], [0], [1], [0, 0, 1, 1], [], []>} : vector<8x64xf32>, vector<64x32xf32>, vector<8x32xf32> -> vector<8x32xf32>
    %c0_116 = arith.constant 0 : index
    %c0_117 = arith.constant 0 : index
    %c0_118 = arith.constant 0 : index
    %165 = vector.load %arg18[%c0_116, %c0_117, %c0_118] : memref<2x1x32xf32, #tpu.memory_space<vmem>>, vector<1x1x32xf32>
    %166 = vector.shape_cast %165 : vector<1x1x32xf32> to vector<1x32xf32>
    %167 = vector.broadcast %166 : vector<1x32xf32> to vector<8x32xf32>
    %168 = arith.addf %164, %167 : vector<8x32xf32>
    %169 = arith.addf %168, %141 : vector<8x32xf32>
    %c0_119 = arith.constant 0 : index
    %c0_120 = arith.constant 0 : index
    %c0_121 = arith.constant 0 : index
    %170 = vector.load %arg19[%c0_119, %c0_120, %c0_121] : memref<2x1x32xf32, #tpu.memory_space<vmem>>, vector<1x1x32xf32>
    %171 = vector.shape_cast %170 : vector<1x1x32xf32> to vector<1x32xf32>
    %c0_122 = arith.constant 0 : index
    %c0_123 = arith.constant 0 : index
    %c0_124 = arith.constant 0 : index
    %172 = vector.load %arg20[%c0_122, %c0_123, %c0_124] : memref<2x1x32xf32, #tpu.memory_space<vmem>>, vector<1x1x32xf32>
    %173 = vector.shape_cast %172 : vector<1x1x32xf32> to vector<1x32xf32>
    %cst_125 = arith.constant dense<0.000000e+00> : vector<8xf32>
    %174 = vector.multi_reduction <add>, %169, %cst_125 [1] : vector<8x32xf32> to vector<8xf32>
    %175 = vector.shape_cast %174 : vector<8xf32> to vector<8x1xf32>
    %cst_126 = arith.constant 3.200000e+01 : f32
    %176 = vector.broadcast %cst_126 : f32 to vector<8x1xf32>
    %177 = arith.divf %175, %176 : vector<8x1xf32>
    %178 = vector.broadcast %177 : vector<8x1xf32> to vector<8x32xf32>
    %179 = arith.subf %169, %178 : vector<8x32xf32>
    %180 = arith.mulf %179, %179 : vector<8x32xf32>
    %cst_127 = arith.constant dense<0.000000e+00> : vector<8xf32>
    %181 = vector.multi_reduction <add>, %180, %cst_127 [1] : vector<8x32xf32> to vector<8xf32>
    %182 = vector.shape_cast %181 : vector<8xf32> to vector<8x1xf32>
    %cst_128 = arith.constant 3.200000e+01 : f32
    %183 = vector.broadcast %cst_128 : f32 to vector<8x1xf32>
    %184 = arith.divf %182, %183 : vector<8x1xf32>
    %185 = vector.broadcast %177 : vector<8x1xf32> to vector<8x32xf32>
    %186 = arith.subf %169, %185 : vector<8x32xf32>
    %cst_129 = arith.constant 9.99999996E-13 : f32
    %187 = vector.broadcast %cst_129 : f32 to vector<8x1xf32>
    %188 = arith.addf %184, %187 : vector<8x1xf32>
    %189 = math.rsqrt %188 : vector<8x1xf32>
    %190 = vector.broadcast %189 : vector<8x1xf32> to vector<8x32xf32>
    %191 = arith.mulf %186, %190 : vector<8x32xf32>
    %192 = vector.broadcast %171 : vector<1x32xf32> to vector<8x32xf32>
    %193 = arith.mulf %191, %192 : vector<8x32xf32>
    %194 = vector.broadcast %173 : vector<1x32xf32> to vector<8x32xf32>
    %195 = arith.addf %193, %194 : vector<8x32xf32>
    %cst_130 = arith.constant 0.000000e+00 : f32
    %196 = vector.broadcast %cst_130 : f32 to vector<8x32xf32>
    %c1_131 = arith.constant 1 : index
    %c0_132 = arith.constant 0 : index
    %c0_133 = arith.constant 0 : index
    %c0_134 = arith.constant 0 : index
    %197 = vector.load %arg5[%c1_131, %c0_132, %c0_133, %c0_134] : memref<2x2x32x16xf32, #tpu.memory_space<vmem>>, vector<1x1x32x16xf32>
    %198 = vector.shape_cast %197 : vector<1x1x32x16xf32> to vector<32x16xf32>
    %cst_135 = arith.constant dense<0.000000e+00> : vector<8x16xf32>
    %199 = tpu.matmul %195, %198, %cst_135 {dimension_numbers = #tpu.dot_dimension_numbers<[1], [0], [0], [1], [0, 0, 1, 1], [], []>} : vector<8x32xf32>, vector<32x16xf32>, vector<8x16xf32> -> vector<8x16xf32>
    %c1_136 = arith.constant 1 : index
    %c0_137 = arith.constant 0 : index
    %c0_138 = arith.constant 0 : index
    %c0_139 = arith.constant 0 : index
    %200 = vector.load %arg6[%c1_136, %c0_137, %c0_138, %c0_139] : memref<2x2x1x16xf32, #tpu.memory_space<vmem>>, vector<1x1x1x16xf32>
    %201 = vector.shape_cast %200 : vector<1x1x1x16xf32> to vector<1x16xf32>
    %202 = vector.broadcast %201 : vector<1x16xf32> to vector<8x16xf32>
    %203 = arith.addf %199, %202 : vector<8x16xf32>
    %c1_140 = arith.constant 1 : index
    %c0_141 = arith.constant 0 : index
    %c0_142 = arith.constant 0 : index
    %c0_143 = arith.constant 0 : index
    %204 = vector.load %arg7[%c1_140, %c0_141, %c0_142, %c0_143] : memref<2x2x32x16xf32, #tpu.memory_space<vmem>>, vector<1x1x32x16xf32>
    %205 = vector.shape_cast %204 : vector<1x1x32x16xf32> to vector<32x16xf32>
    %cst_144 = arith.constant dense<0.000000e+00> : vector<8x16xf32>
    %206 = tpu.matmul %195, %205, %cst_144 {dimension_numbers = #tpu.dot_dimension_numbers<[1], [0], [0], [1], [0, 0, 1, 1], [], []>} : vector<8x32xf32>, vector<32x16xf32>, vector<8x16xf32> -> vector<8x16xf32>
    %c1_145 = arith.constant 1 : index
    %c0_146 = arith.constant 0 : index
    %c0_147 = arith.constant 0 : index
    %c0_148 = arith.constant 0 : index
    %207 = vector.load %arg8[%c1_145, %c0_146, %c0_147, %c0_148] : memref<2x2x1x16xf32, #tpu.memory_space<vmem>>, vector<1x1x1x16xf32>
    %208 = vector.shape_cast %207 : vector<1x1x1x16xf32> to vector<1x16xf32>
    %209 = vector.broadcast %208 : vector<1x16xf32> to vector<8x16xf32>
    %210 = arith.addf %206, %209 : vector<8x16xf32>
    %c1_149 = arith.constant 1 : index
    %c0_150 = arith.constant 0 : index
    %c0_151 = arith.constant 0 : index
    %c0_152 = arith.constant 0 : index
    %211 = vector.load %arg9[%c1_149, %c0_150, %c0_151, %c0_152] : memref<2x2x32x16xf32, #tpu.memory_space<vmem>>, vector<1x1x32x16xf32>
    %212 = vector.shape_cast %211 : vector<1x1x32x16xf32> to vector<32x16xf32>
    %cst_153 = arith.constant dense<0.000000e+00> : vector<8x16xf32>
    %213 = tpu.matmul %195, %212, %cst_153 {dimension_numbers = #tpu.dot_dimension_numbers<[1], [0], [0], [1], [0, 0, 1, 1], [], []>} : vector<8x32xf32>, vector<32x16xf32>, vector<8x16xf32> -> vector<8x16xf32>
    %c1_154 = arith.constant 1 : index
    %c0_155 = arith.constant 0 : index
    %c0_156 = arith.constant 0 : index
    %c0_157 = arith.constant 0 : index
    %214 = vector.load %arg10[%c1_154, %c0_155, %c0_156, %c0_157] : memref<2x2x1x16xf32, #tpu.memory_space<vmem>>, vector<1x1x1x16xf32>
    %215 = vector.shape_cast %214 : vector<1x1x1x16xf32> to vector<1x16xf32>
    %216 = vector.broadcast %215 : vector<1x16xf32> to vector<8x16xf32>
    %217 = arith.addf %213, %216 : vector<8x16xf32>
    %cst_158 = arith.constant dense<0.000000e+00> : vector<8x8xf32>
    %218 = tpu.matmul %203, %210, %cst_158 {dimension_numbers = #tpu.dot_dimension_numbers<[1], [1], [0], [0], [0, 0, 1, 0], [], []>} : vector<8x16xf32>, vector<8x16xf32>, vector<8x8xf32> -> vector<8x8xf32>
    %cst_159 = arith.constant 2.500000e-01 : f32
    %219 = vector.broadcast %cst_159 : f32 to vector<8x8xf32>
    %220 = arith.mulf %218, %219 : vector<8x8xf32>
    %221 = vector.broadcast %27 : vector<1x8xf32> to vector<8x8xf32>
    %222 = arith.addf %220, %221 : vector<8x8xf32>
    %cst_160 = arith.constant dense<0xFF800000> : vector<8xf32>
    %223 = vector.multi_reduction <maximumf>, %222, %cst_160 [1] : vector<8x8xf32> to vector<8xf32>
    %224 = vector.shape_cast %223 : vector<8xf32> to vector<8x1xf32>
    %225 = vector.broadcast %224 : vector<8x1xf32> to vector<8x8xf32>
    %226 = arith.subf %222, %225 : vector<8x8xf32>
    %227 = math.exp %226 : vector<8x8xf32>
    %cst_161 = arith.constant dense<0.000000e+00> : vector<8xf32>
    %228 = vector.multi_reduction <add>, %227, %cst_161 [1] : vector<8x8xf32> to vector<8xf32>
    %229 = vector.shape_cast %228 : vector<8xf32> to vector<8x1xf32>
    %230 = tpu.reciprocal %229 {approx = true} : vector<8x1xf32> -> vector<8x1xf32>
    %231 = vector.broadcast %230 : vector<8x1xf32> to vector<8x8xf32>
    %232 = arith.mulf %227, %231 : vector<8x8xf32>
    %cst_162 = arith.constant dense<0.000000e+00> : vector<8x16xf32>
    %233 = tpu.matmul %232, %217, %cst_162 {dimension_numbers = #tpu.dot_dimension_numbers<[1], [0], [0], [1], [0, 0, 1, 1], [], []>} : vector<8x8xf32>, vector<8x16xf32>, vector<8x16xf32> -> vector<8x16xf32>
    %c1_163 = arith.constant 1 : index
    %c0_164 = arith.constant 0 : index
    %c0_165 = arith.constant 0 : index
    %c0_166 = arith.constant 0 : index
    %234 = vector.load %arg11[%c1_163, %c0_164, %c0_165, %c0_166] : memref<2x2x16x32xf32, #tpu.memory_space<vmem>>, vector<1x1x16x32xf32>
    %235 = vector.shape_cast %234 : vector<1x1x16x32xf32> to vector<16x32xf32>
    %cst_167 = arith.constant dense<0.000000e+00> : vector<8x32xf32>
    %236 = tpu.matmul %233, %235, %cst_167 {dimension_numbers = #tpu.dot_dimension_numbers<[1], [0], [0], [1], [0, 0, 1, 1], [], []>} : vector<8x16xf32>, vector<16x32xf32>, vector<8x32xf32> -> vector<8x32xf32>
    %237 = arith.addf %196, %236 : vector<8x32xf32>
    %c1_168 = arith.constant 1 : index
    %c1_169 = arith.constant 1 : index
    %c0_170 = arith.constant 0 : index
    %c0_171 = arith.constant 0 : index
    %238 = vector.load %arg5[%c1_168, %c1_169, %c0_170, %c0_171] : memref<2x2x32x16xf32, #tpu.memory_space<vmem>>, vector<1x1x32x16xf32>
    %239 = vector.shape_cast %238 : vector<1x1x32x16xf32> to vector<32x16xf32>
    %cst_172 = arith.constant dense<0.000000e+00> : vector<8x16xf32>
    %240 = tpu.matmul %195, %239, %cst_172 {dimension_numbers = #tpu.dot_dimension_numbers<[1], [0], [0], [1], [0, 0, 1, 1], [], []>} : vector<8x32xf32>, vector<32x16xf32>, vector<8x16xf32> -> vector<8x16xf32>
    %c1_173 = arith.constant 1 : index
    %c1_174 = arith.constant 1 : index
    %c0_175 = arith.constant 0 : index
    %c0_176 = arith.constant 0 : index
    %241 = vector.load %arg6[%c1_173, %c1_174, %c0_175, %c0_176] : memref<2x2x1x16xf32, #tpu.memory_space<vmem>>, vector<1x1x1x16xf32>
    %242 = vector.shape_cast %241 : vector<1x1x1x16xf32> to vector<1x16xf32>
    %243 = vector.broadcast %242 : vector<1x16xf32> to vector<8x16xf32>
    %244 = arith.addf %240, %243 : vector<8x16xf32>
    %c1_177 = arith.constant 1 : index
    %c1_178 = arith.constant 1 : index
    %c0_179 = arith.constant 0 : index
    %c0_180 = arith.constant 0 : index
    %245 = vector.load %arg7[%c1_177, %c1_178, %c0_179, %c0_180] : memref<2x2x32x16xf32, #tpu.memory_space<vmem>>, vector<1x1x32x16xf32>
    %246 = vector.shape_cast %245 : vector<1x1x32x16xf32> to vector<32x16xf32>
    %cst_181 = arith.constant dense<0.000000e+00> : vector<8x16xf32>
    %247 = tpu.matmul %195, %246, %cst_181 {dimension_numbers = #tpu.dot_dimension_numbers<[1], [0], [0], [1], [0, 0, 1, 1], [], []>} : vector<8x32xf32>, vector<32x16xf32>, vector<8x16xf32> -> vector<8x16xf32>
    %c1_182 = arith.constant 1 : index
    %c1_183 = arith.constant 1 : index
    %c0_184 = arith.constant 0 : index
    %c0_185 = arith.constant 0 : index
    %248 = vector.load %arg8[%c1_182, %c1_183, %c0_184, %c0_185] : memref<2x2x1x16xf32, #tpu.memory_space<vmem>>, vector<1x1x1x16xf32>
    %249 = vector.shape_cast %248 : vector<1x1x1x16xf32> to vector<1x16xf32>
    %250 = vector.broadcast %249 : vector<1x16xf32> to vector<8x16xf32>
    %251 = arith.addf %247, %250 : vector<8x16xf32>
    %c1_186 = arith.constant 1 : index
    %c1_187 = arith.constant 1 : index
    %c0_188 = arith.constant 0 : index
    %c0_189 = arith.constant 0 : index
    %252 = vector.load %arg9[%c1_186, %c1_187, %c0_188, %c0_189] : memref<2x2x32x16xf32, #tpu.memory_space<vmem>>, vector<1x1x32x16xf32>
    %253 = vector.shape_cast %252 : vector<1x1x32x16xf32> to vector<32x16xf32>
    %cst_190 = arith.constant dense<0.000000e+00> : vector<8x16xf32>
    %254 = tpu.matmul %195, %253, %cst_190 {dimension_numbers = #tpu.dot_dimension_numbers<[1], [0], [0], [1], [0, 0, 1, 1], [], []>} : vector<8x32xf32>, vector<32x16xf32>, vector<8x16xf32> -> vector<8x16xf32>
    %c1_191 = arith.constant 1 : index
    %c1_192 = arith.constant 1 : index
    %c0_193 = arith.constant 0 : index
    %c0_194 = arith.constant 0 : index
    %255 = vector.load %arg10[%c1_191, %c1_192, %c0_193, %c0_194] : memref<2x2x1x16xf32, #tpu.memory_space<vmem>>, vector<1x1x1x16xf32>
    %256 = vector.shape_cast %255 : vector<1x1x1x16xf32> to vector<1x16xf32>
    %257 = vector.broadcast %256 : vector<1x16xf32> to vector<8x16xf32>
    %258 = arith.addf %254, %257 : vector<8x16xf32>
    %cst_195 = arith.constant dense<0.000000e+00> : vector<8x8xf32>
    %259 = tpu.matmul %244, %251, %cst_195 {dimension_numbers = #tpu.dot_dimension_numbers<[1], [1], [0], [0], [0, 0, 1, 0], [], []>} : vector<8x16xf32>, vector<8x16xf32>, vector<8x8xf32> -> vector<8x8xf32>
    %cst_196 = arith.constant 2.500000e-01 : f32
    %260 = vector.broadcast %cst_196 : f32 to vector<8x8xf32>
    %261 = arith.mulf %259, %260 : vector<8x8xf32>
    %262 = vector.broadcast %27 : vector<1x8xf32> to vector<8x8xf32>
    %263 = arith.addf %261, %262 : vector<8x8xf32>
    %cst_197 = arith.constant dense<0xFF800000> : vector<8xf32>
    %264 = vector.multi_reduction <maximumf>, %263, %cst_197 [1] : vector<8x8xf32> to vector<8xf32>
    %265 = vector.shape_cast %264 : vector<8xf32> to vector<8x1xf32>
    %266 = vector.broadcast %265 : vector<8x1xf32> to vector<8x8xf32>
    %267 = arith.subf %263, %266 : vector<8x8xf32>
    %268 = math.exp %267 : vector<8x8xf32>
    %cst_198 = arith.constant dense<0.000000e+00> : vector<8xf32>
    %269 = vector.multi_reduction <add>, %268, %cst_198 [1] : vector<8x8xf32> to vector<8xf32>
    %270 = vector.shape_cast %269 : vector<8xf32> to vector<8x1xf32>
    %271 = tpu.reciprocal %270 {approx = true} : vector<8x1xf32> -> vector<8x1xf32>
    %272 = vector.broadcast %271 : vector<8x1xf32> to vector<8x8xf32>
    %273 = arith.mulf %268, %272 : vector<8x8xf32>
    %cst_199 = arith.constant dense<0.000000e+00> : vector<8x16xf32>
    %274 = tpu.matmul %273, %258, %cst_199 {dimension_numbers = #tpu.dot_dimension_numbers<[1], [0], [0], [1], [0, 0, 1, 1], [], []>} : vector<8x8xf32>, vector<8x16xf32>, vector<8x16xf32> -> vector<8x16xf32>
    %c1_200 = arith.constant 1 : index
    %c1_201 = arith.constant 1 : index
    %c0_202 = arith.constant 0 : index
    %c0_203 = arith.constant 0 : index
    %275 = vector.load %arg11[%c1_200, %c1_201, %c0_202, %c0_203] : memref<2x2x16x32xf32, #tpu.memory_space<vmem>>, vector<1x1x16x32xf32>
    %276 = vector.shape_cast %275 : vector<1x1x16x32xf32> to vector<16x32xf32>
    %cst_204 = arith.constant dense<0.000000e+00> : vector<8x32xf32>
    %277 = tpu.matmul %274, %276, %cst_204 {dimension_numbers = #tpu.dot_dimension_numbers<[1], [0], [0], [1], [0, 0, 1, 1], [], []>} : vector<8x16xf32>, vector<16x32xf32>, vector<8x32xf32> -> vector<8x32xf32>
    %278 = arith.addf %237, %277 : vector<8x32xf32>
    %c1_205 = arith.constant 1 : index
    %c0_206 = arith.constant 0 : index
    %c0_207 = arith.constant 0 : index
    %279 = vector.load %arg12[%c1_205, %c0_206, %c0_207] : memref<2x1x32xf32, #tpu.memory_space<vmem>>, vector<1x1x32xf32>
    %280 = vector.shape_cast %279 : vector<1x1x32xf32> to vector<1x32xf32>
    %281 = vector.broadcast %280 : vector<1x32xf32> to vector<8x32xf32>
    %282 = arith.addf %278, %281 : vector<8x32xf32>
    %283 = arith.addf %282, %195 : vector<8x32xf32>
    %c1_208 = arith.constant 1 : index
    %c0_209 = arith.constant 0 : index
    %c0_210 = arith.constant 0 : index
    %284 = vector.load %arg13[%c1_208, %c0_209, %c0_210] : memref<2x1x32xf32, #tpu.memory_space<vmem>>, vector<1x1x32xf32>
    %285 = vector.shape_cast %284 : vector<1x1x32xf32> to vector<1x32xf32>
    %c1_211 = arith.constant 1 : index
    %c0_212 = arith.constant 0 : index
    %c0_213 = arith.constant 0 : index
    %286 = vector.load %arg14[%c1_211, %c0_212, %c0_213] : memref<2x1x32xf32, #tpu.memory_space<vmem>>, vector<1x1x32xf32>
    %287 = vector.shape_cast %286 : vector<1x1x32xf32> to vector<1x32xf32>
    %cst_214 = arith.constant dense<0.000000e+00> : vector<8xf32>
    %288 = vector.multi_reduction <add>, %283, %cst_214 [1] : vector<8x32xf32> to vector<8xf32>
    %289 = vector.shape_cast %288 : vector<8xf32> to vector<8x1xf32>
    %cst_215 = arith.constant 3.200000e+01 : f32
    %290 = vector.broadcast %cst_215 : f32 to vector<8x1xf32>
    %291 = arith.divf %289, %290 : vector<8x1xf32>
    %292 = vector.broadcast %291 : vector<8x1xf32> to vector<8x32xf32>
    %293 = arith.subf %283, %292 : vector<8x32xf32>
    %294 = arith.mulf %293, %293 : vector<8x32xf32>
    %cst_216 = arith.constant dense<0.000000e+00> : vector<8xf32>
    %295 = vector.multi_reduction <add>, %294, %cst_216 [1] : vector<8x32xf32> to vector<8xf32>
    %296 = vector.shape_cast %295 : vector<8xf32> to vector<8x1xf32>
    %cst_217 = arith.constant 3.200000e+01 : f32
    %297 = vector.broadcast %cst_217 : f32 to vector<8x1xf32>
    %298 = arith.divf %296, %297 : vector<8x1xf32>
    %299 = vector.broadcast %291 : vector<8x1xf32> to vector<8x32xf32>
    %300 = arith.subf %283, %299 : vector<8x32xf32>
    %cst_218 = arith.constant 9.99999996E-13 : f32
    %301 = vector.broadcast %cst_218 : f32 to vector<8x1xf32>
    %302 = arith.addf %298, %301 : vector<8x1xf32>
    %303 = math.rsqrt %302 : vector<8x1xf32>
    %304 = vector.broadcast %303 : vector<8x1xf32> to vector<8x32xf32>
    %305 = arith.mulf %300, %304 : vector<8x32xf32>
    %306 = vector.broadcast %285 : vector<1x32xf32> to vector<8x32xf32>
    %307 = arith.mulf %305, %306 : vector<8x32xf32>
    %308 = vector.broadcast %287 : vector<1x32xf32> to vector<8x32xf32>
    %309 = arith.addf %307, %308 : vector<8x32xf32>
    %c1_219 = arith.constant 1 : index
    %c0_220 = arith.constant 0 : index
    %c0_221 = arith.constant 0 : index
    %310 = vector.load %arg15[%c1_219, %c0_220, %c0_221] : memref<2x32x64xf32, #tpu.memory_space<vmem>>, vector<1x32x64xf32>
    %311 = vector.shape_cast %310 : vector<1x32x64xf32> to vector<32x64xf32>
    %cst_222 = arith.constant dense<0.000000e+00> : vector<8x64xf32>
    %312 = tpu.matmul %309, %311, %cst_222 {dimension_numbers = #tpu.dot_dimension_numbers<[1], [0], [0], [1], [0, 0, 1, 1], [], []>} : vector<8x32xf32>, vector<32x64xf32>, vector<8x64xf32> -> vector<8x64xf32>
    %c1_223 = arith.constant 1 : index
    %c0_224 = arith.constant 0 : index
    %c0_225 = arith.constant 0 : index
    %313 = vector.load %arg16[%c1_223, %c0_224, %c0_225] : memref<2x1x64xf32, #tpu.memory_space<vmem>>, vector<1x1x64xf32>
    %314 = vector.shape_cast %313 : vector<1x1x64xf32> to vector<1x64xf32>
    %315 = vector.broadcast %314 : vector<1x64xf32> to vector<8x64xf32>
    %316 = arith.addf %312, %315 : vector<8x64xf32>
    %cst_226 = arith.constant 5.000000e-01 : f32
    %317 = vector.broadcast %cst_226 : f32 to vector<8x64xf32>
    %318 = arith.mulf %317, %316 : vector<8x64xf32>
    %cst_227 = arith.constant 4.471500e-02 : f32
    %319 = vector.broadcast %cst_227 : f32 to vector<8x64xf32>
    %320 = arith.mulf %319, %316 : vector<8x64xf32>
    %321 = arith.mulf %320, %316 : vector<8x64xf32>
    %322 = arith.mulf %321, %316 : vector<8x64xf32>
    %323 = arith.addf %316, %322 : vector<8x64xf32>
    %cst_228 = arith.constant 0.797884583 : f32
    %324 = vector.broadcast %cst_228 : f32 to vector<8x64xf32>
    %325 = arith.mulf %324, %323 : vector<8x64xf32>
    %326 = math.tanh %325 : vector<8x64xf32>
    %cst_229 = arith.constant 1.000000e+00 : f32
    %327 = vector.broadcast %cst_229 : f32 to vector<8x64xf32>
    %328 = arith.addf %327, %326 : vector<8x64xf32>
    %329 = arith.mulf %318, %328 : vector<8x64xf32>
    %c1_230 = arith.constant 1 : index
    %c0_231 = arith.constant 0 : index
    %c0_232 = arith.constant 0 : index
    %330 = vector.load %arg17[%c1_230, %c0_231, %c0_232] : memref<2x64x32xf32, #tpu.memory_space<vmem>>, vector<1x64x32xf32>
    %331 = vector.shape_cast %330 : vector<1x64x32xf32> to vector<64x32xf32>
    %cst_233 = arith.constant dense<0.000000e+00> : vector<8x32xf32>
    %332 = tpu.matmul %329, %331, %cst_233 {dimension_numbers = #tpu.dot_dimension_numbers<[1], [0], [0], [1], [0, 0, 1, 1], [], []>} : vector<8x64xf32>, vector<64x32xf32>, vector<8x32xf32> -> vector<8x32xf32>
    %c1_234 = arith.constant 1 : index
    %c0_235 = arith.constant 0 : index
    %c0_236 = arith.constant 0 : index
    %333 = vector.load %arg18[%c1_234, %c0_235, %c0_236] : memref<2x1x32xf32, #tpu.memory_space<vmem>>, vector<1x1x32xf32>
    %334 = vector.shape_cast %333 : vector<1x1x32xf32> to vector<1x32xf32>
    %335 = vector.broadcast %334 : vector<1x32xf32> to vector<8x32xf32>
    %336 = arith.addf %332, %335 : vector<8x32xf32>
    %337 = arith.addf %336, %309 : vector<8x32xf32>
    %c1_237 = arith.constant 1 : index
    %c0_238 = arith.constant 0 : index
    %c0_239 = arith.constant 0 : index
    %338 = vector.load %arg19[%c1_237, %c0_238, %c0_239] : memref<2x1x32xf32, #tpu.memory_space<vmem>>, vector<1x1x32xf32>
    %339 = vector.shape_cast %338 : vector<1x1x32xf32> to vector<1x32xf32>
    %c1_240 = arith.constant 1 : index
    %c0_241 = arith.constant 0 : index
    %c0_242 = arith.constant 0 : index
    %340 = vector.load %arg20[%c1_240, %c0_241, %c0_242] : memref<2x1x32xf32, #tpu.memory_space<vmem>>, vector<1x1x32xf32>
    %341 = vector.shape_cast %340 : vector<1x1x32xf32> to vector<1x32xf32>
    %cst_243 = arith.constant dense<0.000000e+00> : vector<8xf32>
    %342 = vector.multi_reduction <add>, %337, %cst_243 [1] : vector<8x32xf32> to vector<8xf32>
    %343 = vector.shape_cast %342 : vector<8xf32> to vector<8x1xf32>
    %cst_244 = arith.constant 3.200000e+01 : f32
    %344 = vector.broadcast %cst_244 : f32 to vector<8x1xf32>
    %345 = arith.divf %343, %344 : vector<8x1xf32>
    %346 = vector.broadcast %345 : vector<8x1xf32> to vector<8x32xf32>
    %347 = arith.subf %337, %346 : vector<8x32xf32>
    %348 = arith.mulf %347, %347 : vector<8x32xf32>
    %cst_245 = arith.constant dense<0.000000e+00> : vector<8xf32>
    %349 = vector.multi_reduction <add>, %348, %cst_245 [1] : vector<8x32xf32> to vector<8xf32>
    %350 = vector.shape_cast %349 : vector<8xf32> to vector<8x1xf32>
    %cst_246 = arith.constant 3.200000e+01 : f32
    %351 = vector.broadcast %cst_246 : f32 to vector<8x1xf32>
    %352 = arith.divf %350, %351 : vector<8x1xf32>
    %353 = vector.broadcast %345 : vector<8x1xf32> to vector<8x32xf32>
    %354 = arith.subf %337, %353 : vector<8x32xf32>
    %cst_247 = arith.constant 9.99999996E-13 : f32
    %355 = vector.broadcast %cst_247 : f32 to vector<8x1xf32>
    %356 = arith.addf %352, %355 : vector<8x1xf32>
    %357 = math.rsqrt %356 : vector<8x1xf32>
    %358 = vector.broadcast %357 : vector<8x1xf32> to vector<8x32xf32>
    %359 = arith.mulf %354, %358 : vector<8x32xf32>
    %360 = vector.broadcast %339 : vector<1x32xf32> to vector<8x32xf32>
    %361 = arith.mulf %359, %360 : vector<8x32xf32>
    %362 = vector.broadcast %341 : vector<1x32xf32> to vector<8x32xf32>
    %363 = arith.addf %361, %362 : vector<8x32xf32>
    %364 = vector.extract_strided_slice %363 {offsets = [0, 0], sizes = [1, 32], strides = [1, 1]} : vector<8x32xf32> to vector<1x32xf32>
    %c0_248 = arith.constant 0 : index
    %c0_249 = arith.constant 0 : index
    %365 = vector.load %arg21[%c0_248, %c0_249] : memref<32x4xf32, #tpu.memory_space<vmem>>, vector<32x4xf32>
    %cst_250 = arith.constant dense<0.000000e+00> : vector<1x4xf32>
    %366 = tpu.matmul %364, %365, %cst_250 {dimension_numbers = #tpu.dot_dimension_numbers<[1], [0], [0], [1], [0, 0, 1, 1], [], []>} : vector<1x32xf32>, vector<32x4xf32>, vector<1x4xf32> -> vector<1x4xf32>
    %c0_251 = arith.constant 0 : index
    %c0_252 = arith.constant 0 : index
    %367 = vector.load %arg22[%c0_251, %c0_252] : memref<1x4xf32, #tpu.memory_space<vmem>>, vector<1x4xf32>
    %368 = arith.addf %366, %367 : vector<1x4xf32>
    %c0_253 = arith.constant 0 : index
    %c0_254 = arith.constant 0 : index
    %c0_255 = arith.constant 0 : index
    %369 = vector.load %arg23[%c0_253, %c0_254, %c0_255] : memref<1x1x4xf32, #tpu.memory_space<vmem>>, vector<1x1x4xf32>
    %370 = vector.shape_cast %369 : vector<1x1x4xf32> to vector<1x4xf32>
    %371 = vector.shape_cast %368 : vector<1x4xf32> to vector<1x1x4xf32>
    tpu.vector_store %arg23[%c0_253, %c0_254, %c0_255], %371 {strides = array<i32>} : memref<1x1x4xf32, #tpu.memory_space<vmem>>, vector<1x1x4xf32>,
    return
  }
  func.func @transform_0(%arg0: i32) -> (i32, i32, i32) {
    %c0_i32 = arith.constant 0 : i32
    %c0_i32_0 = arith.constant 0 : i32
    %c0_i32_1 = arith.constant 0 : i32
    return %arg0, %c0_i32, %c0_i32_0 : i32, i32, i32
  }
  func.func @transform_1(%arg0: i32) -> (i32, i32, i32) {
    %c0_i32 = arith.constant 0 : i32
    %c0_i32_0 = arith.constant 0 : i32
    %c0_i32_1 = arith.constant 0 : i32
    return %arg0, %c0_i32, %c0_i32_0 : i32, i32, i32
  }
  func.func @transform_2(%arg0: i32) -> (i32, i32) {
    %c0_i32 = arith.constant 0 : i32
    %c0_i32_0 = arith.constant 0 : i32
    %c0_i32_1 = arith.constant 0 : i32
    return %c0_i32, %c0_i32_0 : i32, i32
  }
  func.func @transform_3(%arg0: i32) -> (i32, i32) {
    %c0_i32 = arith.constant 0 : i32
    %c0_i32_0 = arith.constant 0 : i32
    %c0_i32_1 = arith.constant 0 : i32
    return %c0_i32, %c0_i32_0 : i32, i32
  }
  func.func @transform_4(%arg0: i32) -> (i32, i32, i32, i32) {
    %c0_i32 = arith.constant 0 : i32
    %c0_i32_0 = arith.constant 0 : i32
    %c0_i32_1 = arith.constant 0 : i32
    %c0_i32_2 = arith.constant 0 : i32
    %c0_i32_3 = arith.constant 0 : i32
    return %c0_i32, %c0_i32_0, %c0_i32_1, %c0_i32_2 : i32, i32, i32, i32
  }
  func.func @transform_5(%arg0: i32) -> (i32, i32, i32, i32) {
    %c0_i32 = arith.constant 0 : i32
    %c0_i32_0 = arith.constant 0 : i32
    %c0_i32_1 = arith.constant 0 : i32
    %c0_i32_2 = arith.constant 0 : i32
    %c0_i32_3 = arith.constant 0 : i32
    return %c0_i32, %c0_i32_0, %c0_i32_1, %c0_i32_2 : i32, i32, i32, i32
  }
  func.func @transform_6(%arg0: i32) -> (i32, i32, i32, i32) {
    %c0_i32 = arith.constant 0 : i32
    %c0_i32_0 = arith.constant 0 : i32
    %c0_i32_1 = arith.constant 0 : i32
    %c0_i32_2 = arith.constant 0 : i32
    %c0_i32_3 = arith.constant 0 : i32
    return %c0_i32, %c0_i32_0, %c0_i32_1, %c0_i32_2 : i32, i32, i32, i32
  }
  func.func @transform_7(%arg0: i32) -> (i32, i32, i32, i32) {
    %c0_i32 = arith.constant 0 : i32
    %c0_i32_0 = arith.constant 0 : i32
    %c0_i32_1 = arith.constant 0 : i32
    %c0_i32_2 = arith.constant 0 : i32
    %c0_i32_3 = arith.constant 0 : i32
    return %c0_i32, %c0_i32_0, %c0_i32_1, %c0_i32_2 : i32, i32, i32, i32
  }
  func.func @transform_8(%arg0: i32) -> (i32, i32, i32, i32) {
    %c0_i32 = arith.constant 0 : i32
    %c0_i32_0 = arith.constant 0 : i32
    %c0_i32_1 = arith.constant 0 : i32
    %c0_i32_2 = arith.constant 0 : i32
    %c0_i32_3 = arith.constant 0 : i32
    return %c0_i32, %c0_i32_0, %c0_i32_1, %c0_i32_2 : i32, i32, i32, i32
  }
  func.func @transform_9(%arg0: i32) -> (i32, i32, i32, i32) {
    %c0_i32 = arith.constant 0 : i32
    %c0_i32_0 = arith.constant 0 : i32
    %c0_i32_1 = arith.constant 0 : i32
    %c0_i32_2 = arith.constant 0 : i32
    %c0_i32_3 = arith.constant 0 : i32
    return %c0_i32, %c0_i32_0, %c0_i32_1, %c0_i32_2 : i32, i32, i32, i32
  }
  func.func @transform_10(%arg0: i32) -> (i32, i32, i32, i32) {
    %c0_i32 = arith.constant 0 : i32
    %c0_i32_0 = arith.constant 0 : i32
    %c0_i32_1 = arith.constant 0 : i32
    %c0_i32_2 = arith.constant 0 : i32
    %c0_i32_3 = arith.constant 0 : i32
    return %c0_i32, %c0_i32_0, %c0_i32_1, %c0_i32_2 : i32, i32, i32, i32
  }
  func.func @transform_11(%arg0: i32) -> (i32, i32, i32) {
    %c0_i32 = arith.constant 0 : i32
    %c0_i32_0 = arith.constant 0 : i32
    %c0_i32_1 = arith.constant 0 : i32
    %c0_i32_2 = arith.constant 0 : i32
    return %c0_i32, %c0_i32_0, %c0_i32_1 : i32, i32, i32
  }
  func.func @transform_12(%arg0: i32) -> (i32, i32, i32) {
    %c0_i32 = arith.constant 0 : i32
    %c0_i32_0 = arith.constant 0 : i32
    %c0_i32_1 = arith.constant 0 : i32
    %c0_i32_2 = arith.constant 0 : i32
    return %c0_i32, %c0_i32_0, %c0_i32_1 : i32, i32, i32
  }
  func.func @transform_13(%arg0: i32) -> (i32, i32, i32) {
    %c0_i32 = arith.constant 0 : i32
    %c0_i32_0 = arith.constant 0 : i32
    %c0_i32_1 = arith.constant 0 : i32
    %c0_i32_2 = arith.constant 0 : i32
    return %c0_i32, %c0_i32_0, %c0_i32_1 : i32, i32, i32
  }
  func.func @transform_14(%arg0: i32) -> (i32, i32, i32) {
    %c0_i32 = arith.constant 0 : i32
    %c0_i32_0 = arith.constant 0 : i32
    %c0_i32_1 = arith.constant 0 : i32
    %c0_i32_2 = arith.constant 0 : i32
    return %c0_i32, %c0_i32_0, %c0_i32_1 : i32, i32, i32
  }
  func.func @transform_15(%arg0: i32) -> (i32, i32, i32) {
    %c0_i32 = arith.constant 0 : i32
    %c0_i32_0 = arith.constant 0 : i32
    %c0_i32_1 = arith.constant 0 : i32
    %c0_i32_2 = arith.constant 0 : i32
    return %c0_i32, %c0_i32_0, %c0_i32_1 : i32, i32, i32
  }
  func.func @transform_16(%arg0: i32) -> (i32, i32, i32) {
    %c0_i32 = arith.constant 0 : i32
    %c0_i32_0 = arith.constant 0 : i32
    %c0_i32_1 = arith.constant 0 : i32
    %c0_i32_2 = arith.constant 0 : i32
    return %c0_i32, %c0_i32_0, %c0_i32_1 : i32, i32, i32
  }
  func.func @transform_17(%arg0: i32) -> (i32, i32, i32) {
    %c0_i32 = arith.constant 0 : i32
    %c0_i32_0 = arith.constant 0 : i32
    %c0_i32_1 = arith.constant 0 : i32
    %c0_i32_2 = arith.constant 0 : i32
    return %c0_i32, %c0_i32_0, %c0_i32_1 : i32, i32, i32
  }
  func.func @transform_18(%arg0: i32) -> (i32, i32, i32) {
    %c0_i32 = arith.constant 0 : i32
    %c0_i32_0 = arith.constant 0 : i32
    %c0_i32_1 = arith.constant 0 : i32
    %c0_i32_2 = arith.constant 0 : i32
    return %c0_i32, %c0_i32_0, %c0_i32_1 : i32, i32, i32
  }
  func.func @transform_19(%arg0: i32) -> (i32, i32, i32) {
    %c0_i32 = arith.constant 0 : i32
    %c0_i32_0 = arith.constant 0 : i32
    %c0_i32_1 = arith.constant 0 : i32
    %c0_i32_2 = arith.constant 0 : i32
    return %c0_i32, %c0_i32_0, %c0_i32_1 : i32, i32, i32
  }
  func.func @transform_20(%arg0: i32) -> (i32, i32) {
    %c0_i32 = arith.constant 0 : i32
    %c0_i32_0 = arith.constant 0 : i32
    %c0_i32_1 = arith.constant 0 : i32
    return %c0_i32, %c0_i32_0 : i32, i32
  }
  func.func @transform_21(%arg0: i32) -> (i32, i32) {
    %c0_i32 = arith.constant 0 : i32
    %c0_i32_0 = arith.constant 0 : i32
    %c0_i32_1 = arith.constant 0 : i32
    return %c0_i32, %c0_i32_0 : i32, i32
  }
  func.func @transform_22(%arg0: i32) -> (i32, i32, i32) {
    %c0_i32 = arith.constant 0 : i32
    %c0_i32_0 = arith.constant 0 : i32
    %c0_i32_1 = arith.constant 0 : i32
    return %arg0, %c0_i32, %c0_i32_0 : i32, i32, i32
  }
}

</mosaic_0001>

<bundles_post_ra>
// kernel: forward.1
= control target key start
LH: loop header
LB: loop body
LE: loop exit
PB: predicated region body
PF: predicated region fallthrough
CT: control target
= control target key end

     0   :  { %s2773_s0 = inlined_call_operand.vmem [shape: f32[2,8,32], index: 0, kind: input, shape index: {}]   ;;  %s2774_s1 = inlined_call_operand.vmem [shape: f32[2,1,8], index: 1, kind: input, shape index: {}]   ;;  %s2775_s2 = inlined_call_operand.vmem [shape: f32[1,32], index: 2, kind: input, shape index: {}]   ;;  %s2776_s3 = inlined_call_operand.vmem [shape: f32[1,32], index: 3, kind: input, shape index: {}]   ;;  %s2777_s4 = inlined_call_operand.vmem [shape: f32[2,2,32,16], index: 4, kind: input, shape index: {}]   ;;  %s2778_s5 = inlined_call_operand.vmem [shape: f32[2,2,1,16], index: 5, kind: input, shape index: {}]   ;;  %s2779_s6 = inlined_call_operand.vmem [shape: f32[2,2,32,16], index: 6, kind: input, shape index: {}]   ;;  %s2780_s7 = inlined_call_operand.vmem [shape: f32[2,2,1,16], index: 7, kind: input, shape index: {}]   ;;  %s2781_s8 = inlined_call_operand.vmem [shape: f32[2,2,32,16], index: 8, kind: input, shape index: {}]   ;;  %s2782_s9 = inlined_call_operand.vmem [shape: f32[2,2,1,16], index: 9, kind: input, shape index: {}]   ;;  %s2783_s10 = inlined_call_operand.vmem [shape: f32[2,2,16,32], index: 10, kind: input, shape index: {}]   ;;  %s2784_s11 = inlined_call_operand.vmem [shape: f32[2,1,32], index: 11, kind: input, shape index: {}]   ;;  %s2785_s12 = inlined_call_operand.vmem [shape: f32[2,1,32], index: 12, kind: input, shape index: {}]   ;;  %s2786_s13 = inlined_call_operand.vmem [shape: f32[2,1,32], index: 13, kind: input, shape index: {}]   ;;  %s2787_s14 = inlined_call_operand.vmem [shape: f32[2,32,64], index: 14, kind: input, shape index: {}]   ;;  %s2788_s15 = inlined_call_operand.vmem [shape: f32[2,1,64], index: 15, kind: input, shape index: {}]   ;;  %s2789_s16 = inlined_call_operand.vmem [shape: f32[2,64,32], index: 16, kind: input, shape index: {}]   ;;  %s2790_s17 = inlined_call_operand.vmem [shape: f32[2,1,32], index: 17, kind: input, shape index: {}]   ;;  %s2791_s18 = inlined_call_operand.vmem [shape: f32[2,1,32], index: 18, kind: input, shape index: {}]   ;;  %s2792_s19 = inlined_call_operand.vmem [shape: f32[2,1,32], index: 19, kind: input, shape index: {}]   ;;  %s2793_s20 = inlined_call_operand.vmem [shape: f32[32,4], index: 20, kind: input, shape index: {}]   ;;  %s2794_s21 = inlined_call_operand.vmem [shape: f32[1,4], index: 21, kind: input, shape index: {}]   ;;  %s2795_s22 = inlined_call_operand.hbm [shape: f32[2,1,4], index: 22, kind: output, shape index: {}]  }
   0x1   :  { %2809 = sst [smem:[#allocation12_spill]] %s2773_s0 }
   0x2   :  { %2810 = sst [smem:[#allocation13_spill]] %s2774_s1 }
   0x3   :  { %2811 = sst [smem:[#allocation14_spill]] %s2775_s2 }
   0x4   :  { %2812 = sst [smem:[#allocation15_spill]] %s2776_s3 }
   0x5   :  { %2813 = sst [smem:[#allocation16_spill]] %s2777_s4 }
   0x6   :  { %2814 = sst [smem:[#allocation17_spill]] %s2778_s5 }
   0x7   :  { %2815 = sst [smem:[#allocation18_spill]] %s2779_s6 }
   0x8   :  { %2816 = sst [smem:[#allocation19_spill]] %s2780_s7 }
   0x9   :  { %2817 = sst [smem:[#allocation20_spill]] %s2781_s8 }
   0xa   :  { %2818 = sst [smem:[#allocation21_spill]] %s2782_s9 }
   0xb   :  { %2819 = sst [smem:[#allocation22_spill]] %s2794_s21 }
   0xc   :  { %27 = vsyncpa [#allocation3], 0 }
   0xd   :  { %29 = vsyncpa [#allocation3 + $0x1], 0  ;;  %s2250_s3 = smov 0   ;;  %s2252_s28 = smov 0  }
   0xe   :  { %s2254_s29 = smov 0   ;;  %s2256_s30 = smov 0  }
   0xf LB: > { %2820 = sst [smem:[#allocation5_spill]] %s2120_s3  ;;  %s2271_s4 = sadd.s32 4294967295, %s2132_s30   ;;  %s2132_s30 = sphi %s2256_s30, %s2846_s30   ;;  %s2128_s29 = sphi %s2254_s29, %s2848_s29   ;;  %s2124_s28 = sphi %s2252_s28, %s2850_s28   ;;  %s2120_s3 = sphi %s2250_s3, %s2849_s3  }
  0x10   : > { %2821 = sst [smem:[#allocation6_spill]] %s2128_s29  ;;  %s1859_s0 = sadd.s32 4294967294, %s2132_s30  }
  0x11   : > { %2822 = sst [smem:[#allocation7_spill]] %s2132_s30  ;;  %s2275_s23 = sadd.s32 1, %s2132_s30  }
  0x12   : > { %2823 = sst [smem:[#allocation8_spill]] %s2275_s23  ;;  %s514_s1 = sadd.s32 1, %s2128_s29 }
  0x13   : > { %s511_s5 = ssub.s32 %s2132_s30, %s2275_s23  ;;  %p524_p0 = scmp.ne.s32.totalorder %s2128_s29, %s2124_s28 }
  0x14   : > { %p512_p1 = scmp.eq.s32.totalorder %s511_s5, 0  ;;  %p525_p2 = scmp.eq.s32.totalorder %s2271_s4, 1 }
  0x15   : > { %p530_p3 = scmp.ne.s32.totalorder %s2124_s28, %s2120_s3  ;;  %p531_p4 = scmp.eq.s32.totalorder %s1859_s0, 1 }
  0x16   : > { %s2286_s24 = scalar_select %p512_p1, %s2128_s29, %s514_s1  }
  0x17   : > { %p2288_p5 = por %p525_p2, %p524_p0  ;;  %p2292_p6 = por %p531_p4, %p530_p3 }
  0x18   : > { %2824 = sst [smem:[#allocation9_spill]] %s2286_s24  ;;  %p1862_p7 = scmp.ge.s32.totalorder %s2132_s30, 1 }
  0x19   : > { %s2825_s6 = scalar_select %p2288_p5, 1, 0 }
  0x1a   : > { %s2827_s25 = scalar_select %p2292_p6, 1, 0 }
  0x1b   : > { %2826 = sst [smem:[#allocation10_spill]] %s2825_s6  ;;  %p622_p8 = scmp.lt.s32.totalorder %s2132_s30, 3 }
  0x1c   : > { %2828 = sst [smem:[#allocation11_spill]] %s2827_s25 }
  0x1d   : > { %p623_p9 = pnand %p1862_p7, %p622_p8 }
  0x1e   : > { %p685_p10 = scmp.lt.s32.totalorder (!%p623_p9), %s2271_s4, 1  ;;  %s2829_s1 = sld [smem:[#allocation13_spill]] (!%p623_p9) }
  0x1f   : > { %626 = sbr.rel (%p623_p9) target bundleno = 4442 (0x115a), region = 108  ;;  %s2830_s23 = sld [smem:[#allocation12_spill]] (!%p623_p9) }
  0x20   : > { %s2831_s24 = sld [smem:[#allocation16_spill]] (!%p623_p9) }
  0x21   : > { %s2832_s27 = sld [smem:[#allocation18_spill]] (!%p623_p9) }
  0x22   : > { %s2833_s8 = sld [smem:[#allocation20_spill]] (!%p623_p9) }
  0x23   : > { %s2834_s5 = sld [smem:[#allocation14_spill]] (!%p623_p9) }
  0x24   : > { %s2300_s26 = scalar_select %p685_p10, %s2271_s4, 1  ;;  %vm695_vm0 = vcmask 261120   ;;  %v2134_v2 = vmov 32.0   ;;  %vm821_vm5 = vcmask 130048   ;;  %vm853_vm6 = vcmask 64512  }
  0x25   : > { %2038 = vrcp.f32 %v2134_v2  ;;  %s2835_s0 = sld [smem:[#allocation15_spill]]  ;;  %vm1181_vm10 = vcmask 523264  }
  0x26   : > { %s1863_s2 = sshll.u32 %s2300_s26, 3  ;;  %v737_v14 = vld [vmem:[%s2831_s24 + $0x18] sm:$0xff]  ;;  %v736_v17 = vld [vmem:[%s2831_s24 + $0x10] sm:$0xff]  ;;  %v735_v20 = vld [vmem:[%s2831_s24 + $0x8] sm:$0xff]  ;;  %s2836_s7 = sld [smem:[#allocation19_spill]] }
  0x27   : > { %s688_s25 = scalar_lea.vmem %s2830_s23, %s1863_s2  ;;  %v768_v15 = vld [vmem:[%s2832_s27 + $0x18] sm:$0xff]  ;;  %757 = vmatpush.msra.mxu0 %v737_v14  ;;  %v767_v18 = vld [vmem:[%s2832_s27 + $0x10] sm:$0xff]  ;;  %v766_v21 = vld [vmem:[%s2832_s27 + $0x8] sm:$0xff]  ;;  %s2837_s29 = sld [smem:[#allocation17_spill]] }
  0x28   : > { %v692_v0 = vld [vmem:[%s688_s25] sm:$0xff]  ;;  %v796_v16 = vld [vmem:[%s2833_s8 + $0x18] sm:$0xff]  ;;  %785 = vmatpush.msra.mxu1 %v768_v15  ;;  %v795_v19 = vld [vmem:[%s2833_s8 + $0x10] sm:$0xff]  ;;  %s2839_s9 = sld [smem:[#allocation21_spill]]  ;;  %s2840_s30 = scalar_lea.vmem %s2829_s1, %s2300_s26 }
  0x29   : > { %v696_v1 = vsel %vm695_vm0, %v692_v0, 0.0  ;;  %813 = vmatpush.msra.mxu2 %v796_v16  ;;  %758 = vmatpush.msra.mxu0 %v736_v17  ;;  %v794_v22 = vld [vmem:[%s2833_s8 + $0x8] sm:$0xff]  ;;  %v734_v23 = vld [vmem:[%s2831_s24] sm:$0xff]  ;;  %v1873_v26 = vld [vmem:[%s2831_s24 + $0x38] sm:$0xff]  ;;  %s2841_s21 = sld [smem:[#allocation22_spill]]  ;;  %s2090_s2 = scalar_lea.hbm %s2795_s22, 2 }
  0x2a   : > { %697 = vadd.xlane.f32.xlu0 %v696_v1  ;;  %786 = vmatpush.msra.mxu1 %v767_v18  ;;  %v765_v24 = vld [vmem:[%s2832_s27] sm:$0xff]  ;;  %v1885_v27 = vld [vmem:[%s2833_s8 + $0x38] sm:$0xff]  ;;  %v1872_v28 = vld [vmem:[%s2831_s24 + $0x30] sm:$0xff] }
  0x2b   : > { %v2039_v3 = vpop.eup %2038  ;;  %814 = vmatpush.msra.mxu2 %v795_v19  ;;  %759 = vmatpush.msra.mxu0 %v735_v20  ;;  %v793_v25 = vld [vmem:[%s2833_s8] sm:$0xff]  ;;  %v1884_v29 = vld [vmem:[%s2833_s8 + $0x30] sm:$0xff]  ;;  %v1871_v31 = vld [vmem:[%s2831_s24 + $0x28] sm:$0xff] }
  0x2c   : > { %v700_v4 = vmul.f32 32.0, %v2039_v3  ;;  %vm704_vm1 = vweird.f32 %v2039_v3  ;;  %787 = vmatpush.msra.mxu1 %v766_v21  ;;  %v1883_v32 = vld [vmem:[%s2833_s8 + $0x28] sm:$0xff]  ;;  %v1870_v34 = vld [vmem:[%s2831_s24 + $0x20] sm:$0xff]  ;;  %v1879_v54 = vld [vmem:[%s2832_s27 + $0x38] sm:$0xff] }
  0x2d   : > { %815 = vmatpush.msra.mxu2 %v794_v22  ;;  %760 = vmatpush.msra.mxu0 %v734_v23  ;;  %v1882_v35 = vld [vmem:[%s2833_s8 + $0x20] sm:$0xff]  ;;  %s2838_s23 = smov %s2837_s29  ;;  %v1878_v57 = vld [vmem:[%s2832_s27 + $0x30] sm:$0xff]  ;;  %v1877_v58 = vld [vmem:[%s2832_s27 + $0x28] sm:$0xff] }
  0x2e   : > { %v701_v5 = vsub.f32 1.0, %v700_v4  ;;  %788 = vmatpush.msra.mxu1 %v765_v24  ;;  %v2010_v43 = vld [vmem:[%s2834_s5] ss:$0 sm:$0xff]  ;;  %v2016_v62 = vld [vmem:[%s2839_s9 + $0x1] ss:$0 sm:$0xff]  ;;  %v889_v15 = vld [vmem:[%s2783_s10 + $0x8] sm:$0xff] }
  0x2f   : > { %816 = vmatpush.msra.mxu2 %v793_v25  ;;  %912 = vmatpush.msrb.mxu0 %v1873_v26  ;;  %v2011_v45 = vld [vmem:[%s2835_s0] ss:$0 sm:$0xff]  ;;  %v2014_v19 = vld [vmem:[%s2838_s23 + $0x1] ss:$0 sm:$0xff]  ;;  %s683_s5 = sand.u32 1, %s2124_s28   ;;  %s1791_s0 = scalar_lea.hbm %s2795_s22, %s2271_s4 }
  0x30   : > { %v702_v6 = vmul.f32 %v2039_v3, %v701_v5  ;;  %v2013_v49 = vld [vmem:[%s2836_s7] ss:$0 sm:$0xff]  ;;  %s684_s1 = scalar_lea.vmem [#allocation2], %s683_s5  ;;  %s1783_s26 = scalar_lea.sflag [#allocation3], %s683_s5 }
  0x31   : > { %972 = vmatpush.msrb.mxu2 %v1885_v27  ;;  %913 = vmatpush.msrb.mxu0 %v1872_v28  ;;  %v2012_v50 = vld [vmem:[%s2837_s29] ss:$0 sm:$0xff] }
  0x32   : > { %v703_v7 = vadd.f32 %v2039_v3, %v702_v6  ;;  %v2015_v56 = vld [vmem:[%s2839_s9] ss:$0 sm:$0xff]  ;;  %v2017_v6 = vld [vmem:[%s2836_s7 + $0x1] ss:$0 sm:$0xff] }
  0x33   : > { %973 = vmatpush.msrb.mxu2 %v1884_v29  ;;  %914 = vmatpush.msrb.mxu0 %v1871_v31  ;;  %v1876_v61 = vld [vmem:[%s2832_s27 + $0x20] sm:$0xff] }
  0x34   : > { %v2311_v8 = vsel %vm704_vm1, %v2039_v3, %v703_v7  ;;  %v2427_v1 = vld [vmem:[%s2840_s30] ss:$0 sm:$0xff] }
  0x35   : > { %974 = vmatpush.msrb.mxu2 %v1883_v32  ;;  %915 = vmatpush.msrb.mxu0 %v1870_v34  ;;  %v888_v22 = vld [vmem:[%s2783_s10] sm:$0xff] }
  0x37   : > { %975 = vmatpush.msrb.mxu2 %v1882_v35 }
  0x9d   : > { %v698_v9 = vpop.xlane.xlu0 %697 }
  0x9e   : > { %v706_v10 = vmul.f32 %v2311_v8, %v698_v9 }
  0xa0   : > { %v707_v11 = vsub.f32 %v692_v0, %v706_v10 }
  0xa2   : > { %v708_v12 = vmul.f32 %v707_v11, %v707_v11 }
  0xa4   : > { %v709_v13 = vsel %vm695_vm0, %v708_v12, 0.0 }
  0xa5   : > { %710 = vadd.xlane.f32.xlu0 %v709_v13 }
 0x118   : > { %v711_v30 = vpop.xlane.xlu0 %710 }
 0x119   : > { %v712_v33 = vmul.f32 %v711_v30, %v2311_v8 }
 0x11b   : > { %v713_v36 = vadd.f32 1e-12, %v712_v33  ;;  %v1892_v33 = vld [vmem:[%s2783_s10 + $0x18] sm:$0xff] }
 0x11d   : > { %2040 = vrsqrt.f32 %v713_v36  ;;  %vm720_vm3 = vweird.f32 %v713_v36 }
 0x123   : > { %v2041_v37 = vpop.eup %2040 }
 0x124   : > { %v715_v38 = vmul.f32 %v2041_v37, %v713_v36  ;;  %vm721_vm2 = vweird.f32 %v2041_v37 }
 0x125   : > { %vm722_vm4 = vmor %vm720_vm3, %vm721_vm2 }
 0x126   : > { %v716_v39 = vmul.f32 %v2041_v37, %v715_v38 }
 0x128   : > { %v717_v40 = vmul.f32 0.5, %v716_v39  ;;  %v2018_v39 = vld [vmem:[%s2784_s11] ss:$0 sm:$0xff] }
 0x12a   : > { %v718_v41 = vsub.f32 1.5, %v717_v40 }
 0x12c   : > { %v719_v42 = vmul.f32 %v2041_v37, %v718_v41 }
 0x12e   : > { %v723_v44 = vsel %vm722_vm4, %v2041_v37, %v719_v42  ;;  %v1891_v37 = vld [vmem:[%s2783_s10 + $0x10] sm:$0xff] }
 0x12f   : > { %v724_v46 = vmul.f32 %v723_v44, %v707_v11 }
 0x131   : > { %v728_v47 = vmul.f32 %v2010_v43, %v724_v46 }
 0x133   : > { %v2382_v48 = vadd.f32 %v2011_v45, %v728_v47 }
 0x135   : > { %1864 = vmatmul.msk.f32.vlgmr.msra.gmra.mxu0 %vm695_vm0, %v2382_v48  ;;  %1865 = vmatmul.msk.f32.vlgmr.msra.gmra.mxu1 %vm695_vm0, %v2382_v48 }
 0x136   : > { %1866 = vmatmul.msk.f32.vlgmr.msra.gmra.mxu2 %vm695_vm0, %v2382_v48 }
 0x137   : > { %1085 = vmatpush.msra.mxu2 %v889_v15  ;;  %v1169_v15 = vld [vmem:[%s2789_s16] sm:$0xff] }
 0x139   : > { %1086 = vmatpush.msra.mxu2 %v888_v22 }
 0x13d   : > { %1875 = vmatmul.msk.f32.vlgmr.msrb.gmra.mxu0 %vm695_vm0, %v2382_v48 }
 0x13e   : > { %1887 = vmatmul.msk.f32.vlgmr.msrb.gmra.mxu2 %vm695_vm0, %v2382_v48 }
 0x1b2   : > { %v790_v51 = vpop.f32.mrf.mxu1  ;;  %v762_v52 = vpop.f32.mrf.mxu0 }
 0x1b3   : > { %v791_v53 = vadd.f32 %v2013_v49, %v790_v51  ;;  %v763_v55 = vadd.f32 %v2012_v50, %v762_v52  ;;  %v1132_v52 = vld [vmem:[%s2787_s14 + $0x18] sm:$0xff] }
 0x1b5   : > { %1867 = vmatpush.xpose.msk.msrb.mxu1 %vm821_vm5, %v791_v53  ;;  %v1130_v53 = vld [vmem:[%s2787_s14 + $0x8] sm:$0xff] }
 0x1b8   : > { %1868 = vmatmul.msk.f32.vlgmr.msrb.gmra.mxu1 %vm821_vm5, %v763_v55 }
 0x1b9   : > { %942 = vmatpush.msra.mxu1 %v1879_v54  ;;  %v818_v59 = vpop.f32.mrf.mxu2  ;;  %v1129_v54 = vld [vmem:[%s2787_s14] sm:$0xff] }
 0x1ba   : > { %v819_v60 = vadd.f32 %v2015_v56, %v818_v59  ;;  %v917_v20 = vpop.f32.mrf.mxu0 }
 0x1bb   : > { %943 = vmatpush.msra.mxu1 %v1878_v57  ;;  %v918_v21 = vadd.f32 %v2014_v19, %v917_v20 }
 0x1bc   : > { %883 = vmatpush.msra.mxu3 %v819_v60 }
 0x1bd   : > { %944 = vmatpush.msra.mxu1 %v1877_v58 }
 0x1bf   : > { %945 = vmatpush.msra.mxu1 %v1876_v61 }
 0x1c0   : > { %1881 = vmatmul.msk.f32.vlgmr.msra.gmra.mxu1 %vm695_vm0, %v2382_v48 }
 0x1c1   : > { %v977_v63 = vpop.f32.mrf.mxu2  ;;  %1062 = vmatpush.msrb.mxu1 %v1892_v33 }
 0x1c2   : > { %v978_v0 = vadd.f32 %v2016_v62, %v977_v63 }
 0x1c3   : > { %1063 = vmatpush.msrb.mxu1 %v1891_v37 }
 0x1c4   : > { %1037 = vmatpush.msra.mxu0 %v978_v0  ;;  %v2019_v0 = vld [vmem:[%s2785_s12] ss:$0 sm:$0xff] }
 0x235   : > { %v845_v2 = vpop.f32.mrf.mxu1 }
 0x236   : > { %v848_v3 = vmul.f32 0.25, %v845_v2 }
 0x238   : > { %v852_v4 = vadd.f32 %v2427_v1, %v848_v3 }
 0x23a   : > { %v854_v5 = vsel %vm853_vm6, %v852_v4, -inf }
 0x23b   : > { %855 = vmax.xlane.f32.xlu1 %v854_v5 }
 0x23d   : > { %v947_v7 = vpop.f32.mrf.mxu1 }
 0x23e   : > { %v948_v9 = vadd.f32 %v2017_v6, %v947_v7  ;;  %v1176_v7 = vld [vmem:[%s2789_s16 + $0x38] sm:$0xff] }
 0x23f   : > { %1193 = vmatpush.msrb.mxu0 %v1176_v7 }
 0x240   : > { %1888 = vmatpush.xpose.msk.msrb.mxu3 %vm821_vm5, %v948_v9  ;;  %v1175_v9 = vld [vmem:[%s2789_s16 + $0x30] sm:$0xff] }
 0x241   : > { %1194 = vmatpush.msrb.mxu0 %v1175_v9 }
 0x2ae   : > { %v856_v10 = vpop.xlane.xlu1 %855 }
 0x2af   : > { %v857_v11 = vsub.f32 %v852_v4, %v856_v10  ;;  %v2020_v4 = vld [vmem:[%s2786_s13] ss:$0 sm:$0xff]  ;;  %v1174_v10 = vld [vmem:[%s2789_s16 + $0x28] sm:$0xff] }
 0x2b0   : > { %1195 = vmatpush.msrb.mxu0 %v1174_v10 }
 0x2b1   : > { %v858_v12 = vmul.f32 1.442695, %v857_v11  ;;  %v1173_v11 = vld [vmem:[%s2789_s16 + $0x20] sm:$0xff] }
 0x2b2   : > { %1196 = vmatpush.msrb.mxu0 %v1173_v11  ;;  %v2027_v11 = vld [vmem:[%s2836_s7 + $0x2] ss:$0 sm:$0xff] }
 0x2b3   : > { %2042 = vpow2.f32 %v858_v12  ;;  %v1172_v12 = vld [vmem:[%s2789_s16 + $0x18] sm:$0xff] }
 0x2b4   : > { %1197 = vmatpush.msrb.mxu0 %v1172_v12  ;;  %v2028_v12 = vld [vmem:[%s2839_s9 + $0x2] ss:$0 sm:$0xff] }
 0x2b9   : > { %v2043_v13 = vpop.eup %2042 }
 0x2ba   : > { %v860_v14 = vsel %vm853_vm6, %v2043_v13, 0.0 }
 0x2bb   : > { %861 = vadd.xlane.f32.xlu1 %v860_v14  ;;  %v1170_v14 = vld [vmem:[%s2789_s16 + $0x8] sm:$0xff] }
 0x32e   : > { %v862_v16 = vpop.xlane.xlu1 %861 }
 0x32f   : > { %2044 = vrcp.f32 %v862_v16  ;;  %v2021_v16 = vld [vmem:[%s2788_s15] ss:$0 sm:$0xff] }
 0x335   : > { %v2045_v17 = vpop.eup %2044 }
 0x336   : > { %v864_v18 = vmul.f32 %v2045_v17, %v2043_v13  ;;  %v1171_v13 = vld [vmem:[%s2789_s16 + $0x10] sm:$0xff] }
 0x337   : > { %1198 = vmatpush.msrb.mxu0 %v1171_v13  ;;  %v2026_v13 = vld [vmem:[%s2836_s7 + $0x3] ss:$0 sm:$0xff]  ;;  %s1793_s7 = sshll.u32 %s684_s1, 4  ;;  %s1794_s7 = int_to_ptr.vmem [resolvable:$true] %s1793_s7 }
 0x338   : > { %1869 = vmatmul.msk.f32.vlgmr.msra.gmra.mxu3 %vm853_vm6, %v864_v18 }
 0x339   : > { %1152 = vmatpush.msra.mxu3 %v1132_v52  ;;  %1199 = vmatpush.msrb.mxu0 %v1170_v14  ;;  %v1903_v52 = vld [vmem:[%s2832_s27 + $0x40] sm:$0xff] }
 0x33a   : > { %v2025_v14 = vld [vmem:[%s2838_s23 + $0x2] ss:$0 sm:$0xff] }
 0x33b   : > { %1200 = vmatpush.msrb.mxu0 %v1169_v15 }
 0x340   : > { %1889 = vmatmul.msk.f32.vlgmr.msrb.gmra.mxu3 %vm821_vm5, %v918_v21 }
 0x3bb   : > { %v885_v23 = vpop.f32.mrf.mxu3 }
 0x3bc   : > { %1894 = vmatmul.msk.f32.vlgmr.msra.gmra.mxu2 %vm821_vm5, %v885_v23 }
 0x3c3   : > { %v1003_v24 = vpop.f32.mrf.mxu3 }
 0x3c4   : > { %v1006_v25 = vmul.f32 0.25, %v1003_v24 }
 0x3c6   : > { %v1007_v26 = vadd.f32 %v2427_v1, %v1006_v25 }
 0x3c8   : > { %v1008_v27 = vsel %vm853_vm6, %v1007_v26, -inf }
 0x3c9   : > { %1009 = vmax.xlane.f32.xlu2 %v1008_v27 }
 0x43c   : > { %v1010_v28 = vpop.xlane.xlu2 %1009 }
 0x43d   : > { %v1011_v29 = vsub.f32 %v1007_v26, %v1010_v28  ;;  %v2022_v28 = vld [vmem:[%s2790_s17] ss:$0 sm:$0xff] }
 0x43f   : > { %v1012_v30 = vmul.f32 1.442695, %v1011_v29  ;;  %v1088_v40 = vpop.f32.mrf.mxu2 }
 0x441   : > { %2046 = vpow2.f32 %v1012_v30 }
 0x447   : > { %v2047_v31 = vpop.eup %2046 }
 0x448   : > { %v1014_v32 = vsel %vm853_vm6, %v2047_v31, 0.0 }
 0x449   : > { %1015 = vadd.xlane.f32.xlu2 %v1014_v32 }
 0x4bc   : > { %v1016_v34 = vpop.xlane.xlu2 %1015 }
 0x4bd   : > { %2048 = vrcp.f32 %v1016_v34 }
 0x4c3   : > { %v2049_v35 = vpop.eup %2048 }
 0x4c4   : > { %v1018_v36 = vmul.f32 %v2049_v35, %v2047_v31 }
 0x4c6   : > { %1890 = vmatmul.msk.f32.vlgmr.msra.gmra.mxu0 %vm853_vm6, %v1018_v36 }
 0x543   : > { %v1039_v38 = vpop.f32.mrf.mxu0 }
 0x544   : > { %1893 = vmatmul.msk.f32.vlgmr.msrb.gmra.mxu1 %vm821_vm5, %v1039_v38  ;;  %v1900_v38 = vld [vmem:[%s2831_s24 + $0x58] sm:$0xff] }
 0x545   : > { %1263 = vmatpush.msra.mxu1 %v1900_v38 }
 0x5c1   : > { %v1065_v41 = vpop.f32.mrf.mxu1 }
 0x5c2   : > { %v1089_v42 = vadd.f32 %v1088_v40, %v1065_v41  ;;  %v1912_v40 = vld [vmem:[%s2833_s8 + $0x58] sm:$0xff] }
 0x5c3   : > { %v1929_v41 = vld [vmem:[%s2832_s27 + $0x78] sm:$0xff] }
 0x5c4   : > { %v1095_v43 = vadd.f32 %v2018_v39, %v1089_v42  ;;  %v1906_v39 = vld [vmem:[%s2832_s27 + $0x58] sm:$0xff]  ;;  %1448 = vmatpush.msra.mxu0 %v1929_v41  ;;  %v1899_v42 = vld [vmem:[%s2831_s24 + $0x50] sm:$0xff] }
 0x5c5   : > { %1293 = vmatpush.msrb.mxu2 %v1906_v39  ;;  %1264 = vmatpush.msra.mxu1 %v1899_v42  ;;  %v1919_v39 = vld [vmem:[%s2783_s10 + $0x28] sm:$0xff] }
 0x5c6   : > { %v1096_v44 = vadd.f32 %v1095_v43, %v2382_v48  ;;  %v1131_v48 = vld [vmem:[%s2787_s14 + $0x10] sm:$0xff] }
 0x5c7   : > { %1153 = vmatpush.msra.mxu3 %v1131_v48  ;;  %v1905_v43 = vld [vmem:[%s2832_s27 + $0x50] sm:$0xff]  ;;  %v1909_v48 = vld [vmem:[%s2833_s8 + $0x40] sm:$0xff] }
 0x5c8   : > { %v1099_v45 = vsel %vm695_vm0, %v1096_v44, 0.0  ;;  %1294 = vmatpush.msrb.mxu2 %v1905_v43  ;;  %v2029_v43 = vld [vmem:[%s2838_s23 + $0x3] ss:$0 sm:$0xff] }
 0x5c9   : > { %1100 = vadd.xlane.f32.xlu0 %v1099_v45  ;;  %1154 = vmatpush.msra.mxu3 %v1130_v53  ;;  %v1928_v45 = vld [vmem:[%s2832_s27 + $0x70] sm:$0xff]  ;;  %v1926_v53 = vld [vmem:[%s2832_s27 + $0x60] sm:$0xff] }
 0x5ca   : > { %1449 = vmatpush.msra.mxu0 %v1928_v45 }
 0x5cb   : > { %1155 = vmatpush.msra.mxu3 %v1129_v54  ;;  %v1923_v54 = vld [vmem:[%s2831_s24 + $0x78] sm:$0xff] }
 0x5cd   : > { %1323 = vmatpush.msrb.mxu3 %v1912_v40 }
 0x63c   : > { %v1101_v46 = vpop.xlane.xlu0 %1100 }
 0x63d   : > { %v1102_v47 = vmul.f32 %v1101_v46, %v2311_v8  ;;  %v1898_v46 = vld [vmem:[%s2831_s24 + $0x48] sm:$0xff] }
 0x63e   : > { %1265 = vmatpush.msra.mxu1 %v1898_v46  ;;  %v1918_v46 = vld [vmem:[%s2783_s10 + $0x20] sm:$0xff] }
 0x63f   : > { %v1103_v49 = vsub.f32 %v1096_v44, %v1102_v47  ;;  %v1911_v44 = vld [vmem:[%s2833_s8 + $0x50] sm:$0xff]  ;;  %v1904_v47 = vld [vmem:[%s2832_s27 + $0x48] sm:$0xff] }
 0x640   : > { %1324 = vmatpush.msrb.mxu3 %v1911_v44  ;;  %1295 = vmatpush.msrb.mxu2 %v1904_v47 }
 0x641   : > { %v1104_v50 = vmul.f32 %v1103_v49, %v1103_v49 }
 0x642   : > { %1296 = vmatpush.msrb.mxu2 %v1903_v52 }
 0x643   : > { %v1105_v51 = vsel %vm695_vm0, %v1104_v50, 0.0  ;;  %v1927_v50 = vld [vmem:[%s2832_s27 + $0x68] sm:$0xff] }
 0x644   : > { %1106 = vadd.xlane.f32.xlu1 %v1105_v51  ;;  %v1897_v51 = vld [vmem:[%s2831_s24 + $0x40] sm:$0xff]  ;;  %1450 = vmatpush.msra.mxu0 %v1927_v50 }
 0x645   : > { %1266 = vmatpush.msra.mxu1 %v1897_v51 }
 0x646   : > { %1451 = vmatpush.msra.mxu0 %v1926_v53 }
 0x6b7   : > { %v1107_v55 = vpop.xlane.xlu1 %1106 }
 0x6b8   : > { %v1108_v56 = vmul.f32 %v1107_v55, %v2311_v8  ;;  %v1922_v55 = vld [vmem:[%s2831_s24 + $0x70] sm:$0xff] }
 0x6ba   : > { %v1109_v57 = vadd.f32 1e-12, %v1108_v56 }
 0x6bc   : > { %2050 = vrsqrt.f32 %v1109_v57  ;;  %vm1116_vm8 = vweird.f32 %v1109_v57 }
 0x6c2   : > { %v2051_v58 = vpop.eup %2050 }
 0x6c3   : > { %v1111_v59 = vmul.f32 %v2051_v58, %v1109_v57  ;;  %vm1117_vm7 = vweird.f32 %v2051_v58  ;;  %v1921_v57 = vld [vmem:[%s2831_s24 + $0x68] sm:$0xff] }
 0x6c4   : > { %vm1118_vm9 = vmor %vm1116_vm8, %vm1117_vm7 }
 0x6c5   : > { %v1112_v60 = vmul.f32 %v2051_v58, %v1111_v59  ;;  %v1920_v59 = vld [vmem:[%s2831_s24 + $0x60] sm:$0xff] }
 0x6c7   : > { %v1113_v61 = vmul.f32 0.5, %v1112_v60 }
 0x6c9   : > { %v1114_v62 = vsub.f32 1.5, %v1113_v61 }
 0x6cb   : > { %v1115_v63 = vmul.f32 %v2051_v58, %v1114_v62 }
 0x6cd   : > { %v1119_v2 = vsel %vm1118_vm9, %v2051_v58, %v1115_v63 }
 0x6ce   : > { %v1120_v3 = vmul.f32 %v1119_v2, %v1103_v49  ;;  %v1910_v49 = vld [vmem:[%s2833_s8 + $0x48] sm:$0xff] }
 0x6cf   : > { %1325 = vmatpush.msrb.mxu3 %v1910_v49 }
 0x6d0   : > { %v1124_v5 = vmul.f32 %v2019_v0, %v1120_v3 }
 0x6d1   : > { %1326 = vmatpush.msrb.mxu3 %v1909_v48 }
 0x6d2   : > { %v1128_v6 = vadd.f32 %v2020_v4, %v1124_v5  ;;  %v2023_v4 = vld [vmem:[%s2791_s18] ss:$0 sm:$0xff] }
 0x6d4   : > { %1895 = vmatmul.msk.f32.vlgmr.msra.gmra.mxu3 %vm695_vm0, %v1128_v6 }
 0x6d5   : > { %1418 = vmatpush.msra.mxu3 %v1923_v54 }
 0x6d7   : > { %1419 = vmatpush.msra.mxu3 %v1922_v55 }
 0x6d9   : > { %1420 = vmatpush.msra.mxu3 %v1921_v57  ;;  %v1942_v57 = vld [vmem:[%s2783_s10 + $0x38] sm:$0xff] }
 0x6db   : > { %1421 = vmatpush.msra.mxu3 %v1920_v59 }
 0x757   : > { %v1157_v17 = vpop.f32.mrf.mxu3 }
 0x758   : > { %v1158_v18 = vadd.f32 %v2021_v16, %v1157_v17 }
 0x75a   : > { %v1161_v19 = vmul.f32 0.044715, %v1158_v18  ;;  %v1160_v25 = vmul.f32 0.5, %v1158_v18 }
 0x75c   : > { %v1162_v20 = vmul.f32 %v1161_v19, %v1158_v18 }
 0x75e   : > { %v1163_v21 = vmul.f32 %v1162_v20, %v1158_v18  ;;  %v1935_v20 = vld [vmem:[%s2833_s8 + $0x78] sm:$0xff] }
 0x760   : > { %v1164_v22 = vadd.f32 %v1163_v21, %v1158_v18 }
 0x762   : > { %v1165_v23 = vmul.f32 0.7978846, %v1164_v22 }
 0x764   : > { %2052 = vtanh.f32 %v1165_v23 }
 0x76a   : > { %v2053_v24 = vpop.eup %2052 }
 0x76b   : > { %v1167_v26 = vadd.f32 1.0, %v2053_v24  ;;  %v1934_v24 = vld [vmem:[%s2833_s8 + $0x70] sm:$0xff] }
 0x76d   : > { %v1168_v27 = vmul.f32 %v1167_v26, %v1160_v25  ;;  %v1933_v25 = vld [vmem:[%s2833_s8 + $0x68] sm:$0xff]  ;;  %v1932_v26 = vld [vmem:[%s2833_s8 + $0x60] sm:$0xff]  ;;  %s1795_s8 = sshll.u32 %s1791_s0, 4  ;;  %s1796_s8 = int_to_ptr.hbm [resolvable:$true] %s1795_s8 }
 0x76e   : > { %s2084_s29 = sshra.s32 %s1796_s8, 4  ;;  %s2085_s29 = int_to_ptr.hbm [resolvable:$true] %s2084_s29 }
 0x76f   : > { %1896 = vmatmul.msk.f32.vlgmr.msrb.gmra.mxu0 %vm1181_vm10, %v1168_v27  ;;  %p2091_p0 = scmp.lt.s32.totalorder %s2085_s29, %s2795_s22 }
 0x770   : > { %1568 = vmatpush.msrb.mxu0 %v1942_v57 }
 0x7ec   : > { %v1202_v29 = vpop.f32.mrf.mxu0 }
 0x7ed   : > { %v1203_v30 = vadd.f32 %v2022_v28, %v1202_v29 }
 0x7ef   : > { %v1205_v31 = vadd.f32 %v1203_v30, %v1128_v6  ;;  %v2024_v6 = vld [vmem:[%s2792_s19] ss:$0 sm:$0xff] }
 0x7f1   : > { %v1208_v32 = vsel %vm695_vm0, %v1205_v31, 0.0 }
 0x7f2   : > { %1209 = vadd.xlane.f32.xlu2 %v1208_v32 }
 0x865   : > { %v1210_v33 = vpop.xlane.xlu2 %1209 }
 0x866   : > { %v1211_v34 = vmul.f32 %v1210_v33, %v2311_v8 }
 0x868   : > { %v1212_v35 = vsub.f32 %v1205_v31, %v1211_v34  ;;  %v2030_v31 = vld [vmem:[%s2839_s9 + $0x3] ss:$0 sm:$0xff]  ;;  %s2086_s9 = scalar_lea.hbm %s2085_s29, 1 }
 0x869   : > { %p2087_p11 = scmp.ne.s32.totalorder %s2085_s29, %s2086_s9  ;;  %p2092_p1 = scmp.lt.s32.totalorder %s2090_s2, %s2086_s9 }
 0x86a   : > { %v1213_v36 = vmul.f32 %v1212_v35, %v1212_v35 }
 0x86b   : > { %p2088_p12 = pnand %p2087_p11, %p2288_p5  ;;  %p2093_p2 = por %p2092_p1, %p2091_p0 }
 0x86c   : > { %v1214_v37 = vsel %vm695_vm0, %v1213_v36, 0.0 }
 0x86d   : > { %1215 = vadd.xlane.f32.xlu0 %v1214_v37  ;;  %p2089_p13 = pneg %p2088_p12 }
 0x86f   : > { %p2094_p3 = pnand %p2093_p2, %p2089_p13 }
 0x8e0   : > { %v1216_v56 = vpop.xlane.xlu0 %1215 }
 0x8e1   : > { %v1217_v58 = vmul.f32 %v1216_v56, %v2311_v8 }
 0x8e3   : > { %v1218_v60 = vadd.f32 1e-12, %v1217_v58 }
 0x8e5   : > { %2054 = vrsqrt.f32 %v1218_v60  ;;  %vm1225_vm12 = vweird.f32 %v1218_v60 }
 0x8eb   : > { %v2055_v61 = vpop.eup %2054 }
 0x8ec   : > { %v1220_v62 = vmul.f32 %v2055_v61, %v1218_v60  ;;  %vm1226_vm11 = vweird.f32 %v2055_v61  ;;  %v1941_v60 = vld [vmem:[%s2783_s10 + $0x30] sm:$0xff] }
 0x8ed   : > { %vm1227_vm13 = vmor %vm1225_vm12, %vm1226_vm11  ;;  %1569 = vmatpush.msrb.mxu0 %v1941_v60  ;;  %v1755_v60 = vld [vmem:[%s2793_s20 + $0x18] sm:$0xff] }
 0x8ee   : > { %v1221_v63 = vmul.f32 %v2055_v61, %v1220_v62  ;;  %v2031_v62 = vld [vmem:[%s2784_s11 + $0x1] ss:$0 sm:$0xff] }
 0x8f0   : > { %v1222_v0 = vmul.f32 0.5, %v1221_v63 }
 0x8f2   : > { %v1223_v2 = vsub.f32 1.5, %v1222_v0 }
 0x8f4   : > { %v1224_v3 = vmul.f32 %v2055_v61, %v1223_v2 }
 0x8f6   : > { %v1228_v5 = vsel %vm1227_vm13, %v2055_v61, %v1224_v3 }
 0x8f7   : > { %v1229_v7 = vmul.f32 %v1228_v5, %v1212_v35 }
 0x8f9   : > { %v1233_v9 = vmul.f32 %v2023_v4, %v1229_v7 }
 0x8fb   : > { %v2587_v10 = vadd.f32 %v2024_v6, %v1233_v9 }
 0x8fd   : > { %1902 = vmatmul.msk.f32.vlgmr.msra.gmra.mxu1 %vm695_vm0, %v2587_v10  ;;  %1908 = vmatmul.msk.f32.vlgmr.msrb.gmra.mxu2 %vm695_vm0, %v2587_v10 }
 0x8fe   : > { %1914 = vmatmul.msk.f32.vlgmr.msrb.gmra.mxu3 %vm695_vm0, %v2587_v10  ;;  %1931 = vmatmul.msk.f32.vlgmr.msra.gmra.mxu0 %vm695_vm0, %v2587_v10 }
 0x8ff   : > { %1772 = vmatpush.msra.mxu0 %v1755_v60 }
 0x906   : > { %1925 = vmatmul.msk.f32.vlgmr.msra.gmra.mxu3 %vm695_vm0, %v2587_v10 }
 0x97a   : > { %v1268_v17 = vpop.f32.mrf.mxu1 }
 0x97b   : > { %v1453_v15 = vpop.f32.mrf.mxu0  ;;  %v1269_v23 = vadd.f32 %v2025_v14, %v1268_v17  ;;  %v1949_v14 = vld [vmem:[%s2787_s14 + $0x28] sm:$0xff] }
 0x97c   : > { %v1454_v22 = vadd.f32 %v2026_v13, %v1453_v15  ;;  %v1951_v13 = vld [vmem:[%s2787_s14 + $0x38] sm:$0xff]  ;;  %v1948_v15 = vld [vmem:[%s2787_s14 + $0x20] sm:$0xff] }
 0x980   : > { %v1298_v16 = vpop.f32.mrf.mxu2 }
 0x981   : > { %v1299_v18 = vadd.f32 %v2027_v11, %v1298_v16  ;;  %v1328_v19 = vpop.f32.mrf.mxu3 }
 0x982   : > { %v1329_v21 = vadd.f32 %v2028_v12, %v1328_v19 }
 0x983   : > { %1915 = vmatpush.xpose.msk.msrb.mxu1 %vm821_vm5, %v1299_v18 }
 0x984   : > { %1388 = vmatpush.msra.mxu2 %v1329_v21 }
 0x986   : > { %1938 = vmatpush.xpose.msk.msrb.mxu2 %vm821_vm5, %v1454_v22  ;;  %1916 = vmatmul.msk.f32.vlgmr.msrb.gmra.mxu1 %vm821_vm5, %v1269_v23 }
 0x987   : > { %1478 = vmatpush.msra.mxu1 %v1935_v20 }
 0x989   : > { %1479 = vmatpush.msra.mxu1 %v1934_v24  ;;  %v1423_v44 = vpop.f32.mrf.mxu3 }
 0x98a   : > { %v1424_v45 = vadd.f32 %v2029_v43, %v1423_v44 }
 0x98b   : > { %1480 = vmatpush.msra.mxu1 %v1933_v25  ;;  %v2032_v25 = vld [vmem:[%s2785_s12 + $0x1] ss:$0 sm:$0xff] }
 0x98d   : > { %1481 = vmatpush.msra.mxu1 %v1932_v26 }
 0x98e   : > { %1937 = vmatmul.msk.f32.vlgmr.msra.gmra.mxu1 %vm695_vm0, %v2587_v10 }
 0x98f   : > { %1591 = vmatpush.msrb.mxu1 %v1919_v39  ;;  %v2034_v39 = vld [vmem:[%s2788_s15 + $0x1] ss:$0 sm:$0xff] }
 0x991   : > { %1592 = vmatpush.msrb.mxu1 %v1918_v46 }
 0xa03   : > { %v1354_v27 = vpop.f32.mrf.mxu1 }
 0xa04   : > { %v1357_v28 = vmul.f32 0.25, %v1354_v27 }
 0xa06   : > { %v1358_v29 = vadd.f32 %v2427_v1, %v1357_v28  ;;  %v2033_v28 = vld [vmem:[%s2786_s13 + $0x1] ss:$0 sm:$0xff] }
 0xa08   : > { %v1359_v30 = vsel %vm853_vm6, %v1358_v29, -inf }
 0xa09   : > { %1360 = vmax.xlane.f32.xlu1 %v1359_v30 }
 0xa0b   : > { %v1483_v32 = vpop.f32.mrf.mxu1 }
 0xa0c   : > { %v1484_v33 = vadd.f32 %v2030_v31, %v1483_v32  ;;  %v1961_v31 = vld [vmem:[%s2789_s16 + $0x78] sm:$0xff]  ;;  %v1960_v32 = vld [vmem:[%s2789_s16 + $0x70] sm:$0xff] }
 0xa0e   : > { %1543 = vmatpush.msrb.mxu3 %v1484_v33  ;;  %v1959_v33 = vld [vmem:[%s2789_s16 + $0x68] sm:$0xff] }
 0xa10   : > { %1705 = vmatpush.msra.mxu3 %v1961_v31 }
 0xa12   : > { %1706 = vmatpush.msra.mxu3 %v1960_v32 }
 0xa14   : > { %1707 = vmatpush.msra.mxu3 %v1959_v33 }
 0xa7c   : > { %v1361_v34 = vpop.xlane.xlu1 %1360 }
 0xa7d   : > { %v1362_v35 = vsub.f32 %v1358_v29, %v1361_v34  ;;  %v1958_v34 = vld [vmem:[%s2789_s16 + $0x60] sm:$0xff] }
 0xa7e   : > { %1708 = vmatpush.msra.mxu3 %v1958_v34 }
 0xa7f   : > { %v1363_v36 = vmul.f32 1.442695, %v1362_v35  ;;  %v1957_v35 = vld [vmem:[%s2789_s16 + $0x58] sm:$0xff] }
 0xa80   : > { %1709 = vmatpush.msra.mxu3 %v1957_v35 }
 0xa81   : > { %2056 = vpow2.f32 %v1363_v36  ;;  %v1956_v36 = vld [vmem:[%s2789_s16 + $0x50] sm:$0xff] }
 0xa82   : > { %1710 = vmatpush.msra.mxu3 %v1956_v36 }
 0xa87   : > { %v2057_v37 = vpop.eup %2056 }
 0xa88   : > { %v1365_v38 = vsel %vm853_vm6, %v2057_v37, 0.0 }
 0xa89   : > { %1366 = vadd.xlane.f32.xlu2 %v1365_v38  ;;  %v1954_v38 = vld [vmem:[%s2789_s16 + $0x40] sm:$0xff] }
 0xafc   : > { %v1367_v40 = vpop.xlane.xlu2 %1366 }
 0xafd   : > { %2058 = vrcp.f32 %v1367_v40 }
 0xb03   : > { %v2059_v41 = vpop.eup %2058 }
 0xb04   : > { %v1369_v42 = vmul.f32 %v2059_v41, %v2057_v37  ;;  %v1955_v37 = vld [vmem:[%s2789_s16 + $0x48] sm:$0xff] }
 0xb05   : > { %1711 = vmatpush.msra.mxu3 %v1955_v37 }
 0xb06   : > { %1917 = vmatmul.msk.f32.vlgmr.msra.gmra.mxu2 %vm853_vm6, %v1369_v42 }
 0xb07   : > { %1663 = vmatpush.msra.mxu2 %v1951_v13  ;;  %1712 = vmatpush.msra.mxu3 %v1954_v38 }
 0xb0e   : > { %1939 = vmatmul.msk.f32.vlgmr.msrb.gmra.mxu2 %vm821_vm5, %v1424_v45 }
 0xb89   : > { %v1390_v47 = vpop.f32.mrf.mxu2 }
 0xb8a   : > { %1944 = vmatmul.msk.f32.vlgmr.msrb.gmra.mxu1 %vm821_vm5, %v1390_v47 }
 0xb91   : > { %v1509_v49 = vpop.f32.mrf.mxu2 }
 0xb92   : > { %v1512_v50 = vmul.f32 0.25, %v1509_v49 }
 0xb94   : > { %v1513_v51 = vadd.f32 %v2427_v1, %v1512_v50 }
 0xb96   : > { %v1514_v52 = vsel %vm853_vm6, %v1513_v51, -inf }
 0xb97   : > { %1515 = vmax.xlane.f32.xlu0 %v1514_v52  ;;  %v2035_v52 = vld [vmem:[%s2790_s17 + $0x1] ss:$0 sm:$0xff] }
 0xc07   : > { %v1594_v63 = vpop.f32.mrf.mxu1 }
 0xc0a   : > { %v1516_v48 = vpop.xlane.xlu0 %1515 }
 0xc0b   : > { %v1517_v53 = vsub.f32 %v1513_v51, %v1516_v48 }
 0xc0d   : > { %v1518_v54 = vmul.f32 1.442695, %v1517_v53 }
 0xc0f   : > { %2060 = vpow2.f32 %v1518_v54 }
 0xc15   : > { %v2061_v55 = vpop.eup %2060 }
 0xc16   : > { %v1520_v56 = vsel %vm853_vm6, %v2061_v55, 0.0 }
 0xc17   : > { %1521 = vadd.xlane.f32.xlu1 %v1520_v56 }
 0xc8a   : > { %v1522_v58 = vpop.xlane.xlu1 %1521 }
 0xc8b   : > { %2062 = vrcp.f32 %v1522_v58 }
 0xc91   : > { %v2063_v59 = vpop.eup %2062 }
 0xc92   : > { %v1524_v1 = vmul.f32 %v2063_v59, %v2061_v55 }
 0xc94   : > { %1940 = vmatmul.msk.f32.vlgmr.msrb.gmra.mxu3 %vm853_vm6, %v1524_v1 }
 0xd17   : > { %v1545_v61 = vpop.f32.mrf.mxu3 }
 0xd18   : > { %1943 = vmatmul.msk.f32.vlgmr.msrb.gmra.mxu0 %vm821_vm5, %v1545_v61  ;;  %v1754_v61 = vld [vmem:[%s2793_s20 + $0x10] sm:$0xff]  ;;  %vm1780_vm5 = vcmask 24576  }
 0xd19   : > { %1773 = vmatpush.msra.mxu0 %v1754_v61 }
 0xd95   : > { %v1571_v0 = vpop.f32.mrf.mxu0 }
 0xd96   : > { %v1595_v2 = vadd.f32 %v1594_v63, %v1571_v0  ;;  %v1752_v63 = vld [vmem:[%s2793_s20] sm:$0xff] }
 0xd98   : > { %v1602_v3 = vadd.f32 %v2031_v62, %v1595_v2  ;;  %v1753_v62 = vld [vmem:[%s2793_s20 + $0x8] sm:$0xff] }
 0xd99   : > { %1774 = vmatpush.msra.mxu0 %v1753_v62 }
 0xd9a   : > { %v1603_v4 = vadd.f32 %v1602_v3, %v2587_v10  ;;  %v1950_v10 = vld [vmem:[%s2787_s14 + $0x30] sm:$0xff] }
 0xd9b   : > { %1664 = vmatpush.msra.mxu2 %v1950_v10  ;;  %1775 = vmatpush.msra.mxu0 %v1752_v63 }
 0xd9c   : > { %v1608_v5 = vsel %vm695_vm0, %v1603_v4, 0.0 }
 0xd9d   : > { %1609 = vadd.xlane.f32.xlu2 %v1608_v5  ;;  %1665 = vmatpush.msra.mxu2 %v1949_v14 }
 0xd9f   : > { %1666 = vmatpush.msra.mxu2 %v1948_v15 }
 0xe10   : > { %v1610_v6 = vpop.xlane.xlu2 %1609 }
 0xe11   : > { %v1611_v7 = vmul.f32 %v1610_v6, %v2311_v8 }
 0xe13   : > { %v1612_v9 = vsub.f32 %v1603_v4, %v1611_v7 }
 0xe15   : > { %v1613_v11 = vmul.f32 %v1612_v9, %v1612_v9 }
 0xe17   : > { %v1614_v12 = vsel %vm695_vm0, %v1613_v11, 0.0 }
 0xe18   : > { %1615 = vadd.xlane.f32.xlu0 %v1614_v12  ;;  %v2036_v12 = vld [vmem:[%s2791_s18 + $0x1] ss:$0 sm:$0xff] }
 0xe8b   : > { %v1616_v16 = vpop.xlane.xlu0 %1615 }
 0xe8c   : > { %v1617_v17 = vmul.f32 %v1616_v16, %v2311_v8  ;;  %v1756_v16 = vld [vmem:[%s2841_s21] sm:$0x1] }
 0xe8e   : > { %v1618_v18 = vadd.f32 1e-12, %v1617_v17 }
 0xe90   : > { %2064 = vrsqrt.f32 %v1618_v18  ;;  %vm1625_vm15 = vweird.f32 %v1618_v18 }
 0xe96   : > { %v2065_v19 = vpop.eup %2064 }
 0xe97   : > { %v1620_v20 = vmul.f32 %v2065_v19, %v1618_v18  ;;  %vm1626_vm14 = vweird.f32 %v2065_v19 }
 0xe98   : > { %vm1627_vm1 = vmor %vm1625_vm15, %vm1626_vm14 }
 0xe99   : > { %v1621_v21 = vmul.f32 %v2065_v19, %v1620_v20 }
 0xe9b   : > { %v1622_v22 = vmul.f32 0.5, %v1621_v21 }
 0xe9d   : > { %v1623_v23 = vsub.f32 1.5, %v1622_v22 }
 0xe9f   : > { %v1624_v24 = vmul.f32 %v2065_v19, %v1623_v23 }
 0xea1   : > { %v1628_v26 = vsel %vm1627_vm1, %v2065_v19, %v1624_v24 }
 0xea2   : > { %v1629_v27 = vmul.f32 %v1628_v26, %v1612_v9 }
 0xea4   : > { %v1633_v29 = vmul.f32 %v2032_v25, %v1629_v27 }
 0xea6   : > { %v1637_v30 = vadd.f32 %v2033_v28, %v1633_v29 }
 0xea8   : > { %1953 = vmatmul.msk.f32.vlgmr.msra.gmra.mxu2 %vm695_vm0, %v1637_v30 }
 0xf2b   : > { %v1668_v40 = vpop.f32.mrf.mxu2 }
 0xf2c   : > { %v1669_v41 = vadd.f32 %v2034_v39, %v1668_v40 }
 0xf2e   : > { %v1672_v42 = vmul.f32 0.044715, %v1669_v41  ;;  %v1671_v49 = vmul.f32 0.5, %v1669_v41 }
 0xf30   : > { %v1673_v43 = vmul.f32 %v1672_v42, %v1669_v41 }
 0xf32   : > { %v1674_v44 = vmul.f32 %v1673_v43, %v1669_v41 }
 0xf34   : > { %v1675_v45 = vadd.f32 %v1674_v44, %v1669_v41 }
 0xf36   : > { %v1676_v46 = vmul.f32 0.7978846, %v1675_v45 }
 0xf38   : > { %2066 = vtanh.f32 %v1676_v46 }
 0xf3e   : > { %v2067_v47 = vpop.eup %2066 }
 0xf3f   : > { %v1678_v50 = vadd.f32 1.0, %v2067_v47 }
 0xf41   : > { %v1679_v51 = vmul.f32 %v1678_v50, %v1671_v49 }
 0xf43   : > { %1963 = vmatmul.msk.f32.vlgmr.msra.gmra.mxu3 %vm1181_vm10, %v1679_v51 }
 0xfc6   : > { %v1714_v48 = vpop.f32.mrf.mxu3 }
 0xfc7   : > { %v1715_v53 = vadd.f32 %v2035_v52, %v1714_v48 }
 0xfc9   : > { %v1717_v54 = vadd.f32 %v1715_v53, %v1637_v30 }
 0xfcb   : > { %v1722_v55 = vsel %vm695_vm0, %v1717_v54, 0.0 }
 0xfcc   : > { %1723 = vadd.xlane.f32.xlu1 %v1722_v55 }
0x103f   : > { %v1724_v56 = vpop.xlane.xlu1 %1723 }
0x1040   : > { %v1725_v57 = vmul.f32 %v1724_v56, %v2311_v8 }
0x1042   : > { %v1726_v58 = vsub.f32 %v1717_v54, %v1725_v57 }
0x1044   : > { %v1727_v59 = vmul.f32 %v1726_v58, %v1726_v58 }
0x1046   : > { %v1728_v1 = vsel %vm695_vm0, %v1727_v59, 0.0 }
0x1047   : > { %1729 = vadd.xlane.f32.xlu2 %v1728_v1 }
0x10ba   : > { %v1730_v0 = vpop.xlane.xlu2 %1729 }
0x10bb   : > { %v1731_v2 = vmul.f32 %v1730_v0, %v2311_v8  ;;  %v2037_v8 = vld [vmem:[%s2792_s19 + $0x1] ss:$0 sm:$0xff] }
0x10bd   : > { %v1732_v3 = vadd.f32 1e-12, %v1731_v2 }
0x10bf   : > { %2068 = vrsqrt.f32 %v1732_v3  ;;  %vm1739_vm3 = vweird.f32 %v1732_v3 }
0x10c5   : > { %v2069_v4 = vpop.eup %2068 }
0x10c6   : > { %v1734_v5 = vmul.f32 %v2069_v4, %v1732_v3  ;;  %vm1740_vm2 = vweird.f32 %v2069_v4 }
0x10c7   : > { %vm1741_vm4 = vmor %vm1739_vm3, %vm1740_vm2 }
0x10c8   : > { %v1735_v6 = vmul.f32 %v2069_v4, %v1734_v5 }
0x10ca   : > { %v1736_v7 = vmul.f32 0.5, %v1735_v6 }
0x10cc   : > { %v1737_v9 = vsub.f32 1.5, %v1736_v7 }
0x10ce   : > { %v1738_v11 = vmul.f32 %v2069_v4, %v1737_v9 }
0x10d0   : > { %v1742_v13 = vsel %vm1741_vm4, %v2069_v4, %v1738_v11 }
0x10d1   : > { %v1743_v10 = vmul.f32 %v1742_v13, %v1726_v58 }
0x10d3   : > { %v1747_v14 = vmul.f32 %v2036_v12, %v1743_v10 }
0x10d5   : > { %v1751_v15 = vadd.f32 %v2037_v8, %v1747_v14 }
0x10d7   : > { %1966 = vmatmul.msk.f32.vlgmr.msra.gmra.mxu0 %vm695_vm0, %v1751_v15 }
0x1154   : > { %v1777_v17 = vpop.f32.mrf.mxu0 }
0x1155   : > { %v1778_v18 = vadd.f32 %v1777_v17, %v1756_v16 }
0x1157   : > { %1781 = vst.msk [vmem:[%s684_s1] sm:$0x1] %vm1780_vm5, %v1778_v18 }
0x1158   : > { %2097 = shalt.err (!%p2094_p3)
}
0x1159   : > { %1969 = dma.vmem_to_hbm [thread:$0]  (%p2288_p5), %s1794_s7, 16, %s1796_s8, %s1783_s26  }
0x115a PF: > { %s2843_s1 = sld [smem:[#allocation7_spill]] }
0x115b   : > { %s2844_s5 = sld [smem:[#allocation5_spill]] }
0x1160   : > { %p1975_p4 = scmp.ge.s32.totalorder %s2843_s1, 2 }
0x1161   : > { %s1807_s21 = sand.u32 1, %s2844_s5  }
0x1162   : > { %p1972_p7 = pnand %p1975_p4, %p2292_p6  ;;  %s1808_s4 = scalar_lea.sflag [#allocation3], %s1807_s21 }
0x1164   : > { %p1973_p8 = pneg %p1972_p7 }
0x1166   : > { %2115 = dma.done.wait (%p1973_p8), %s1808_s4, 16  }
0x1167   : > { %2117 = vsyncadd (%p1973_p8), %s1808_s4, 4294967280  ;;  %s2846_s30 = sld [smem:[#allocation8_spill]]  ;;  %s2849_s3 = smov %s2124_s28 }
0x1168   : > { %s2847_s9 = sld [smem:[#allocation6_spill]] }
0x1169   : > { %s2848_s29 = sld [smem:[#allocation9_spill]] }
0x116d   : > { %p32_p9 = scmp.ge.s32.totalorder %s2846_s30, 4  }
0x116e   : > { %s2850_s28 = smov %s2847_s9 }
0x116f   :  { %34 = sbr.rel (!%p32_p9) target bundleno = 15 (0xf), region = 176 }
0x1174   :  { %1813 = vsyncpa [#allocation3], 1 }
0x1175   :  { %1815 = vsyncpa [#allocation3 + $0x1], 1 }

</bundles_post_ra>
